<compile_context>
chip_gen: v7x
topology: tpu7x:2x2x1
jax: 0.10.0
libtpu: 0.0.40
codegen_flags: <defaults>
</compile_context>

<pallas_src>
import functools

import jax
import jax.numpy as jnp
from jax.experimental import pallas as pl
from jax.experimental.pallas import tpu as pltpu

LN_EPS = 1e-5  # PyTorch nn.LayerNorm default


def _layernorm(v, w, b):
    # float32 LayerNorm over last axis with biased variance (matches PyTorch).
    mu = jnp.mean(v, axis=-1, keepdims=True)
    var = jnp.mean(jnp.square(v - mu), axis=-1, keepdims=True)
    return (v - mu) * jax.lax.rsqrt(var + LN_EPS) * w + b


def cross_attention_block_kernel(
        q_ref, kv_ref,
        wq_ref, bq_ref, wk_ref, bk_ref, wv_ref, bv_ref, wo_ref, bo_ref,
        ln1_w_ref, ln1_b_ref,
        wfc_ref, bfc_ref, wproj_ref, bproj_ref,
        ln2_w_ref, ln2_b_ref,
        out_ref, *, n_head, matmul_dtype):
    rows, D = q_ref.shape          # (tile_sq, D) visual rows for this grid step
    sk = kv_ref.shape[0]           # text sequence length
    H = n_head
    hd = D // H
    md = matmul_dtype

    def mm(a, w, b=None):
        # weights arrive pre-cast to `md` from the host; only cast activations.
        r = jnp.dot(a.astype(md), w, preferred_element_type=jnp.float32)
        return r if b is None else r + b

    x_in = q_ref[...].astype(jnp.float32)    # (rows, D)  visual (queries)
    kv_in = kv_ref[...].astype(jnp.float32)  # (Sk, D)    text (keys/values)

    # ---- fused projections (1/sqrt(hd) already folded into wq/bq) ----
    q = mm(x_in, wq_ref[...], bq_ref[...])   # (rows, D) f32
    k = mm(kv_in, wk_ref[...], bk_ref[...])  # (Sk, D)   f32
    v = mm(kv_in, wv_ref[...], bv_ref[...])  # (Sk, D)   f32

    # single activation cast for the attention matmuls (no per-head casts)
    q4 = q.astype(md).reshape(rows, H, hd)
    k4 = k.astype(md).reshape(sk, H, hd)
    v4 = v.astype(md).reshape(sk, H, hd)

    # ---- attention core: head-batched dot_generals, no lane slicing ----
    s = jnp.einsum('qhd,khd->hqk', q4, k4,
                   preferred_element_type=jnp.float32)       # (H, rows, Sk)
    s = s - jnp.max(s, axis=-1, keepdims=True)
    p = jnp.exp(s)
    denom = jnp.sum(p, axis=-1, keepdims=True)               # (H, rows, 1)

    o = jnp.einsum('hqk,khd->hqd', p.astype(md), v4,
                   preferred_element_type=jnp.float32)       # (H, rows, hd)
    # normalize AFTER the PV matmul: rows*D multiplies instead of rows*Sk*H
    o = o * pl.reciprocal(denom, approx=True)

    # ---- single output projection with full K=D contraction ----
    o2d = jnp.transpose(o, (1, 0, 2)).reshape(rows, D)       # (rows, D)
    attn = mm(o2d, wo_ref[...], bo_ref[...])                 # (rows, D)

    # ---- post-norm 1: x = LN1(visual + attn) ----
    x1 = _layernorm(x_in + attn, ln1_w_ref[...], ln1_b_ref[...])

    # ---- FFN with QuickGELU ----
    f = mm(x1, wfc_ref[...], bfc_ref[...])                   # (rows, F)
    f = f * jax.nn.sigmoid(1.702 * f)                        # QuickGELU
    m = mm(f, wproj_ref[...], bproj_ref[...])                # (rows, D)

    # ---- post-norm 2 + output store (lane-dense once D % 128 == 0) ----
    out = _layernorm(x1 + m, ln2_w_ref[...], ln2_b_ref[...])
    out_ref[...] = out.astype(out_ref.dtype)


def cross_attention_block(visual, text, params, n_head=8, *,
                          matmul_dtype=jnp.float32, tile_sq=None):
    """Mirrors CrossAttentionBlock.forward(visual_input, text_features)."""
    B, Sq, D = visual.shape
    _, Sk, _ = text.shape
    hd = D // n_head
    scale = float(hd) ** -0.5

    if tile_sq is None:
        # largest q-row tile <= 256 that evenly divides Sq (VMEM-friendly on
        # v7x; bump to 512-1024 on v6e at real shapes)
        tile_sq = Sq
        if Sq > 256:
            for cand in (256, 128, 64, 32, 16, 8):
                if Sq % cand == 0:
                    tile_sq = cand
                    break
    assert Sq % tile_sq == 0
    num_tiles = Sq // tile_sq

    md = matmul_dtype
    # Host-side weight prep (one-time): fold softmax scale into Q projection,
    # cast matmul weights to the MXU dtype; biases / LN params stay f32.
    wq = (params["wq_t"] * scale).astype(md)
    bq = params["bq"] * scale
    weights = (
        wq, bq,
        params["wk_t"].astype(md), params["bk"],
        params["wv_t"].astype(md), params["bv"],
        params["wo_t"].astype(md), params["bo"],
        params["ln1_w"], params["ln1_b"],
        params["wfc_t"].astype(md), params["bfc"],
        params["wproj_t"].astype(md), params["bproj"],
        params["ln2_w"], params["ln2_b"],
    )

    vmem_full = pl.BlockSpec(memory_space=pltpu.MemorySpace.VMEM)
    grid = (B, num_tiles)

    out = pl.pallas_call(
        functools.partial(cross_attention_block_kernel,
                          n_head=n_head, matmul_dtype=md),
        out_shape=jax.ShapeDtypeStruct((B, Sq, D), visual.dtype),
        grid=grid,
        in_specs=[
            # visual: one (tile_sq, D) row tile per grid step
            pl.BlockSpec((None, tile_sq, D), lambda b, t: (b, t, 0)),
            # text: full (Sk, D) slab for the current batch
            pl.BlockSpec((None, Sk, D), lambda b, t: (b, 0, 0)),
        ] + [vmem_full] * len(weights),
        out_specs=pl.BlockSpec((None, tile_sq, D), lambda b, t: (b, t, 0)),
        compiler_params=pltpu.CompilerParams(
            dimension_semantics=("parallel", "parallel")),
    )(visual, text, *weights)
    return out


def reference(visual, text, params, n_head=8):
    """Pure-JAX reference with identical semantics (for correctness check)."""
    B, Sq, D = visual.shape
    _, Sk, _ = text.shape
    hd = D // n_head
    scale = float(hd) ** -0.5

    def ln(v, w, b):
        mu = v.mean(-1, keepdims=True)
        var = ((v - mu) ** 2).mean(-1, keepdims=True)
        return (v - mu) / jnp.sqrt(var + LN_EPS) * w + b

    q = visual.reshape(B * Sq, D) @ params["wq_t"] + params["bq"]
    k = text.reshape(B * Sk, D) @ params["wk_t"] + params["bk"]
    v = text.reshape(B * Sk, D) @ params["wv_t"] + params["bv"]
    q = q.reshape(B, Sq, n_head, hd) * scale
    k = k.reshape(B, Sk, n_head, hd)
    v = v.reshape(B, Sk, n_head, hd)
    s = jnp.einsum('bqhd,bkhd->bhqk', q, k)
    p = jax.nn.softmax(s, axis=-1)
    o = jnp.einsum('bhqk,bkhd->bqhd', p, v).reshape(B * Sq, D)
    attn = (o @ params["wo_t"] + params["bo"]).reshape(B, Sq, D)

    x = ln(visual + attn, params["ln1_w"], params["ln1_b"])
    f = x.reshape(B * Sq, D) @ params["wfc_t"] + params["bfc"]
    f = f * jax.nn.sigmoid(1.702 * f)
    m = (f @ params["wproj_t"] + params["bproj"]).reshape(B, Sq, D)
    return ln(x + m, params["ln2_w"], params["ln2_b"])


if __name__ == "__main__":
    # Small shapes consistent with the module: heads fixed at 8 -> D % 8 == 0.
    B, Sq, Sk = 2, 8, 16      # batch, visual seq, text seq
    D, F, H = 64, 128, 8      # embed dim, ffn hidden (ff_dim), heads

    key = jax.random.PRNGKey(0)
    ks = jax.random.split(key, 20)

    def w(k, shape, s=0.05):
        return (s * jax.random.normal(k, shape)).astype(jnp.float32)

    # Weights stored pre-transposed so the kernel computes x @ W (+ b),
    # matching PyTorch Linear / MultiheadAttention in_proj semantics.
    params = {
        "wq_t": w(ks[0], (D, D)), "bq": w(ks[1], (1, D)),
        "wk_t": w(ks[2], (D, D)), "bk": w(ks[3], (1, D)),
        "wv_t": w(ks[4], (D, D)), "bv": w(ks[5], (1, D)),
        "wo_t": w(ks[6], (D, D)), "bo": w(ks[7], (1, D)),
        "ln1_w": 1.0 + w(ks[8], (1, D)), "ln1_b": w(ks[9], (1, D)),
        "wfc_t": w(ks[10], (D, F)), "bfc": w(ks[11], (1, F)),
        "wproj_t": w(ks[12], (F, D)), "bproj": w(ks[13], (1, D)),
        "ln2_w": 1.0 + w(ks[14], (1, D)), "ln2_b": w(ks[15], (1, D)),
    }

    visual = jax.random.normal(ks[16], (B, Sq, D), jnp.float32)
    text = jax.random.normal(ks[17], (B, Sk, D), jnp.float32)

    ref = reference(visual, text, params, n_head=H)

    # f32 matmul path (strict check; tolerance covers the EUP approx reciprocal)
    out = cross_attention_block(visual, text, params, n_head=H)
    out = jax.block_until_ready(out)
    assert out.shape == (B, Sq, D)
    assert jnp.allclose(out, ref, atol=2e-3, rtol=2e-3), "f32 mismatch vs reference"

    # bf16 MXU path (the recommended setting on v6e/v7x); loose check vs the
    # f32 reference since the matmuls run in bf16.
    out_bf16 = cross_attention_block(visual, text, params, n_head=H,
                                     matmul_dtype=jnp.bfloat16)
    out_bf16 = jax.block_until_ready(out_bf16)
    assert jnp.allclose(out_bf16, ref, atol=1e-1, rtol=1e-1), "bf16 mismatch vs reference"

    print("KERNEL_OK")
</pallas_src>

<mosaic_0001>
module attributes {stable_mosaic.version = 11 : i64} {
  func.func @cross_attention_block_kernel(%arg0: i32, %arg1: i32, %arg2: memref<1x8x64xf32, #tpu.memory_space<vmem>>, %arg3: memref<1x16x64xf32, #tpu.memory_space<vmem>>, %arg4: memref<64x64xf32, #tpu.memory_space<vmem>>, %arg5: memref<1x64xf32, #tpu.memory_space<vmem>>, %arg6: memref<64x64xf32, #tpu.memory_space<vmem>>, %arg7: memref<1x64xf32, #tpu.memory_space<vmem>>, %arg8: memref<64x64xf32, #tpu.memory_space<vmem>>, %arg9: memref<1x64xf32, #tpu.memory_space<vmem>>, %arg10: memref<64x64xf32, #tpu.memory_space<vmem>>, %arg11: memref<1x64xf32, #tpu.memory_space<vmem>>, %arg12: memref<1x64xf32, #tpu.memory_space<vmem>>, %arg13: memref<1x64xf32, #tpu.memory_space<vmem>>, %arg14: memref<64x128xf32, #tpu.memory_space<vmem>>, %arg15: memref<1x128xf32, #tpu.memory_space<vmem>>, %arg16: memref<128x64xf32, #tpu.memory_space<vmem>>, %arg17: memref<1x64xf32, #tpu.memory_space<vmem>>, %arg18: memref<1x64xf32, #tpu.memory_space<vmem>>, %arg19: memref<1x64xf32, #tpu.memory_space<vmem>>, %arg20: memref<1x8x64xf32, #tpu.memory_space<vmem>>) attributes {dimension_semantics = [#tpu.dimension_semantics<parallel>, #tpu.dimension_semantics<parallel>], iteration_bounds = array<i64: 2, 1>, scalar_prefetch = 0 : i64, scratch_operands = 0 : i64, tpu.core_type = #tpu.core_type<tc>, window_params = [{transform_indices = @transform_0, window_bounds = array<i64: 1, 8, 64>}, {transform_indices = @transform_1, window_bounds = array<i64: 1, 16, 64>}, {pipeline_mode = #tpu.pipeline_mode<synchronous>, transform_indices = @transform_2, window_bounds = array<i64: 64, 64>}, {pipeline_mode = #tpu.pipeline_mode<synchronous>, transform_indices = @transform_3, window_bounds = array<i64: 1, 64>}, {pipeline_mode = #tpu.pipeline_mode<synchronous>, transform_indices = @transform_4, window_bounds = array<i64: 64, 64>}, {pipeline_mode = #tpu.pipeline_mode<synchronous>, transform_indices = @transform_5, window_bounds = array<i64: 1, 64>}, {pipeline_mode = #tpu.pipeline_mode<synchronous>, transform_indices = @transform_6, window_bounds = array<i64: 64, 64>}, {pipeline_mode = #tpu.pipeline_mode<synchronous>, transform_indices = @transform_7, window_bounds = array<i64: 1, 64>}, {pipeline_mode = #tpu.pipeline_mode<synchronous>, transform_indices = @transform_8, window_bounds = array<i64: 64, 64>}, {pipeline_mode = #tpu.pipeline_mode<synchronous>, transform_indices = @transform_9, window_bounds = array<i64: 1, 64>}, {pipeline_mode = #tpu.pipeline_mode<synchronous>, transform_indices = @transform_10, window_bounds = array<i64: 1, 64>}, {pipeline_mode = #tpu.pipeline_mode<synchronous>, transform_indices = @transform_11, window_bounds = array<i64: 1, 64>}, {pipeline_mode = #tpu.pipeline_mode<synchronous>, transform_indices = @transform_12, window_bounds = array<i64: 64, 128>}, {pipeline_mode = #tpu.pipeline_mode<synchronous>, transform_indices = @transform_13, window_bounds = array<i64: 1, 128>}, {pipeline_mode = #tpu.pipeline_mode<synchronous>, transform_indices = @transform_14, window_bounds = array<i64: 128, 64>}, {pipeline_mode = #tpu.pipeline_mode<synchronous>, transform_indices = @transform_15, window_bounds = array<i64: 1, 64>}, {pipeline_mode = #tpu.pipeline_mode<synchronous>, transform_indices = @transform_16, window_bounds = array<i64: 1, 64>}, {pipeline_mode = #tpu.pipeline_mode<synchronous>, transform_indices = @transform_17, window_bounds = array<i64: 1, 64>}, {transform_indices = @transform_18, window_bounds = array<i64: 1, 8, 64>}]} {
    %c0 = arith.constant 0 : index
    %c0_0 = arith.constant 0 : index
    %c0_1 = arith.constant 0 : index
    %0 = vector.load %arg2[%c0, %c0_0, %c0_1] : memref<1x8x64xf32, #tpu.memory_space<vmem>>, vector<1x8x64xf32>
    %1 = vector.shape_cast %0 : vector<1x8x64xf32> to vector<8x64xf32>
    %c0_2 = arith.constant 0 : index
    %c0_3 = arith.constant 0 : index
    %c0_4 = arith.constant 0 : index
    %2 = vector.load %arg3[%c0_2, %c0_3, %c0_4] : memref<1x16x64xf32, #tpu.memory_space<vmem>>, vector<1x16x64xf32>
    %3 = vector.shape_cast %2 : vector<1x16x64xf32> to vector<16x64xf32>
    %c0_5 = arith.constant 0 : index
    %c0_6 = arith.constant 0 : index
    %4 = vector.load %arg4[%c0_5, %c0_6] : memref<64x64xf32, #tpu.memory_space<vmem>>, vector<64x64xf32>
    %c0_7 = arith.constant 0 : index
    %c0_8 = arith.constant 0 : index
    %5 = vector.load %arg5[%c0_7, %c0_8] : memref<1x64xf32, #tpu.memory_space<vmem>>, vector<1x64xf32>
    %cst = arith.constant dense<0.000000e+00> : vector<8x64xf32>
    %6 = tpu.matmul %1, %4, %cst {dimension_numbers = #tpu.dot_dimension_numbers<[1], [0], [0], [1], [0, 0, 1, 1], [], []>} : vector<8x64xf32>, vector<64x64xf32>, vector<8x64xf32> -> vector<8x64xf32>
    %7 = vector.broadcast %5 : vector<1x64xf32> to vector<8x64xf32>
    %8 = arith.addf %6, %7 : vector<8x64xf32>
    %c0_9 = arith.constant 0 : index
    %c0_10 = arith.constant 0 : index
    %9 = vector.load %arg6[%c0_9, %c0_10] : memref<64x64xf32, #tpu.memory_space<vmem>>, vector<64x64xf32>
    %c0_11 = arith.constant 0 : index
    %c0_12 = arith.constant 0 : index
    %10 = vector.load %arg7[%c0_11, %c0_12] : memref<1x64xf32, #tpu.memory_space<vmem>>, vector<1x64xf32>
    %cst_13 = arith.constant dense<0.000000e+00> : vector<16x64xf32>
    %11 = tpu.matmul %3, %9, %cst_13 {dimension_numbers = #tpu.dot_dimension_numbers<[1], [0], [0], [1], [0, 0, 1, 1], [], []>} : vector<16x64xf32>, vector<64x64xf32>, vector<16x64xf32> -> vector<16x64xf32>
    %12 = vector.broadcast %10 : vector<1x64xf32> to vector<16x64xf32>
    %13 = arith.addf %11, %12 : vector<16x64xf32>
    %c0_14 = arith.constant 0 : index
    %c0_15 = arith.constant 0 : index
    %14 = vector.load %arg8[%c0_14, %c0_15] : memref<64x64xf32, #tpu.memory_space<vmem>>, vector<64x64xf32>
    %c0_16 = arith.constant 0 : index
    %c0_17 = arith.constant 0 : index
    %15 = vector.load %arg9[%c0_16, %c0_17] : memref<1x64xf32, #tpu.memory_space<vmem>>, vector<1x64xf32>
    %cst_18 = arith.constant dense<0.000000e+00> : vector<16x64xf32>
    %16 = tpu.matmul %3, %14, %cst_18 {dimension_numbers = #tpu.dot_dimension_numbers<[1], [0], [0], [1], [0, 0, 1, 1], [], []>} : vector<16x64xf32>, vector<64x64xf32>, vector<16x64xf32> -> vector<16x64xf32>
    %17 = vector.broadcast %15 : vector<1x64xf32> to vector<16x64xf32>
    %18 = arith.addf %16, %17 : vector<16x64xf32>
    %19 = vector.shape_cast %8 : vector<8x64xf32> to vector<8x8x8xf32>
    %20 = vector.shape_cast %13 : vector<16x64xf32> to vector<16x8x8xf32>
    %21 = vector.shape_cast %18 : vector<16x64xf32> to vector<16x8x8xf32>
    "tpu.trace_start"() <{level = 10 : i32, message = "qhd,khd->hqk"}> : () -> ()
    %cst_19 = arith.constant dense<0.000000e+00> : vector<8x8x16xf32>
    %22 = tpu.matmul %19, %20, %cst_19 {dimension_numbers = #tpu.dot_dimension_numbers<[2], [2], [0], [0], [0, 1, 0, 0, 1, 0], [1], [1]>} : vector<8x8x8xf32>, vector<16x8x8xf32>, vector<8x8x16xf32> -> vector<8x8x16xf32>
    "tpu.trace_stop"() : () -> ()
    %cst_20 = arith.constant dense<0xFF800000> : vector<8x8xf32>
    %23 = vector.multi_reduction <maximumf>, %22, %cst_20 [2] : vector<8x8x16xf32> to vector<8x8xf32>
    %24 = vector.shape_cast %23 : vector<8x8xf32> to vector<8x8x1xf32>
    %25 = vector.broadcast %24 : vector<8x8x1xf32> to vector<8x8x16xf32>
    %26 = arith.subf %22, %25 : vector<8x8x16xf32>
    %27 = math.exp %26 : vector<8x8x16xf32>
    %cst_21 = arith.constant dense<0.000000e+00> : vector<8x8xf32>
    %28 = vector.multi_reduction <add>, %27, %cst_21 [2] : vector<8x8x16xf32> to vector<8x8xf32>
    %29 = vector.shape_cast %28 : vector<8x8xf32> to vector<8x8x1xf32>
    "tpu.trace_start"() <{level = 10 : i32, message = "hqk,khd->hqd"}> : () -> ()
    %cst_22 = arith.constant dense<0.000000e+00> : vector<8x8x8xf32>
    %30 = tpu.matmul %27, %21, %cst_22 {dimension_numbers = #tpu.dot_dimension_numbers<[2], [0], [1], [2], [0, 0, 0, 1, 1, 2], [0], [1]>} : vector<8x8x16xf32>, vector<16x8x8xf32>, vector<8x8x8xf32> -> vector<8x8x8xf32>
    "tpu.trace_stop"() : () -> ()
    %31 = tpu.reciprocal %29 {approx = true} : vector<8x8x1xf32> -> vector<8x8x1xf32>
    %32 = vector.broadcast %31 : vector<8x8x1xf32> to vector<8x8x8xf32>
    %33 = arith.mulf %30, %32 : vector<8x8x8xf32>
    %34 = tpu.transpose %33, [1, 0, 2] : vector<8x8x8xf32> -> vector<8x8x8xf32>
    %35 = vector.shape_cast %34 : vector<8x8x8xf32> to vector<8x64xf32>
    %c0_23 = arith.constant 0 : index
    %c0_24 = arith.constant 0 : index
    %36 = vector.load %arg10[%c0_23, %c0_24] : memref<64x64xf32, #tpu.memory_space<vmem>>, vector<64x64xf32>
    %c0_25 = arith.constant 0 : index
    %c0_26 = arith.constant 0 : index
    %37 = vector.load %arg11[%c0_25, %c0_26] : memref<1x64xf32, #tpu.memory_space<vmem>>, vector<1x64xf32>
    %cst_27 = arith.constant dense<0.000000e+00> : vector<8x64xf32>
    %38 = tpu.matmul %35, %36, %cst_27 {dimension_numbers = #tpu.dot_dimension_numbers<[1], [0], [0], [1], [0, 0, 1, 1], [], []>} : vector<8x64xf32>, vector<64x64xf32>, vector<8x64xf32> -> vector<8x64xf32>
    %39 = vector.broadcast %37 : vector<1x64xf32> to vector<8x64xf32>
    %40 = arith.addf %38, %39 : vector<8x64xf32>
    %41 = arith.addf %1, %40 : vector<8x64xf32>
    %c0_28 = arith.constant 0 : index
    %c0_29 = arith.constant 0 : index
    %42 = vector.load %arg12[%c0_28, %c0_29] : memref<1x64xf32, #tpu.memory_space<vmem>>, vector<1x64xf32>
    %c0_30 = arith.constant 0 : index
    %c0_31 = arith.constant 0 : index
    %43 = vector.load %arg13[%c0_30, %c0_31] : memref<1x64xf32, #tpu.memory_space<vmem>>, vector<1x64xf32>
    %cst_32 = arith.constant dense<0.000000e+00> : vector<8xf32>
    %44 = vector.multi_reduction <add>, %41, %cst_32 [1] : vector<8x64xf32> to vector<8xf32>
    %45 = vector.shape_cast %44 : vector<8xf32> to vector<8x1xf32>
    %cst_33 = arith.constant 6.400000e+01 : f32
    %46 = vector.broadcast %cst_33 : f32 to vector<8x1xf32>
    %47 = arith.divf %45, %46 : vector<8x1xf32>
    %48 = vector.broadcast %47 : vector<8x1xf32> to vector<8x64xf32>
    %49 = arith.subf %41, %48 : vector<8x64xf32>
    %50 = arith.mulf %49, %49 : vector<8x64xf32>
    %cst_34 = arith.constant dense<0.000000e+00> : vector<8xf32>
    %51 = vector.multi_reduction <add>, %50, %cst_34 [1] : vector<8x64xf32> to vector<8xf32>
    %52 = vector.shape_cast %51 : vector<8xf32> to vector<8x1xf32>
    %cst_35 = arith.constant 6.400000e+01 : f32
    %53 = vector.broadcast %cst_35 : f32 to vector<8x1xf32>
    %54 = arith.divf %52, %53 : vector<8x1xf32>
    %55 = vector.broadcast %47 : vector<8x1xf32> to vector<8x64xf32>
    %56 = arith.subf %41, %55 : vector<8x64xf32>
    %cst_36 = arith.constant 9.99999974E-6 : f32
    %57 = vector.broadcast %cst_36 : f32 to vector<8x1xf32>
    %58 = arith.addf %54, %57 : vector<8x1xf32>
    %59 = math.rsqrt %58 : vector<8x1xf32>
    %60 = vector.broadcast %59 : vector<8x1xf32> to vector<8x64xf32>
    %61 = arith.mulf %56, %60 : vector<8x64xf32>
    %62 = vector.broadcast %42 : vector<1x64xf32> to vector<8x64xf32>
    %63 = arith.mulf %61, %62 : vector<8x64xf32>
    %64 = vector.broadcast %43 : vector<1x64xf32> to vector<8x64xf32>
    %65 = arith.addf %63, %64 : vector<8x64xf32>
    %c0_37 = arith.constant 0 : index
    %c0_38 = arith.constant 0 : index
    %66 = vector.load %arg14[%c0_37, %c0_38] : memref<64x128xf32, #tpu.memory_space<vmem>>, vector<64x128xf32>
    %c0_39 = arith.constant 0 : index
    %c0_40 = arith.constant 0 : index
    %67 = vector.load %arg15[%c0_39, %c0_40] : memref<1x128xf32, #tpu.memory_space<vmem>>, vector<1x128xf32>
    %cst_41 = arith.constant dense<0.000000e+00> : vector<8x128xf32>
    %68 = tpu.matmul %65, %66, %cst_41 {dimension_numbers = #tpu.dot_dimension_numbers<[1], [0], [0], [1], [0, 0, 1, 1], [], []>} : vector<8x64xf32>, vector<64x128xf32>, vector<8x128xf32> -> vector<8x128xf32>
    %69 = vector.broadcast %67 : vector<1x128xf32> to vector<8x128xf32>
    %70 = arith.addf %68, %69 : vector<8x128xf32>
    %cst_42 = arith.constant 1.702000e+00 : f32
    %71 = vector.broadcast %cst_42 : f32 to vector<8x128xf32>
    %72 = arith.mulf %71, %70 : vector<8x128xf32>
    %73 = arith.negf %72 : vector<8x128xf32>
    %74 = math.exp %73 : vector<8x128xf32>
    %cst_43 = arith.constant 1.000000e+00 : f32
    %75 = vector.broadcast %cst_43 : f32 to vector<8x128xf32>
    %76 = arith.addf %75, %74 : vector<8x128xf32>
    %77 = arith.divf %75, %76 : vector<8x128xf32>
    %78 = arith.mulf %70, %77 : vector<8x128xf32>
    %c0_44 = arith.constant 0 : index
    %c0_45 = arith.constant 0 : index
    %79 = vector.load %arg16[%c0_44, %c0_45] : memref<128x64xf32, #tpu.memory_space<vmem>>, vector<128x64xf32>
    %c0_46 = arith.constant 0 : index
    %c0_47 = arith.constant 0 : index
    %80 = vector.load %arg17[%c0_46, %c0_47] : memref<1x64xf32, #tpu.memory_space<vmem>>, vector<1x64xf32>
    %cst_48 = arith.constant dense<0.000000e+00> : vector<8x64xf32>
    %81 = tpu.matmul %78, %79, %cst_48 {dimension_numbers = #tpu.dot_dimension_numbers<[1], [0], [0], [1], [0, 0, 1, 1], [], []>} : vector<8x128xf32>, vector<128x64xf32>, vector<8x64xf32> -> vector<8x64xf32>
    %82 = vector.broadcast %80 : vector<1x64xf32> to vector<8x64xf32>
    %83 = arith.addf %81, %82 : vector<8x64xf32>
    %84 = arith.addf %65, %83 : vector<8x64xf32>
    %c0_49 = arith.constant 0 : index
    %c0_50 = arith.constant 0 : index
    %85 = vector.load %arg18[%c0_49, %c0_50] : memref<1x64xf32, #tpu.memory_space<vmem>>, vector<1x64xf32>
    %c0_51 = arith.constant 0 : index
    %c0_52 = arith.constant 0 : index
    %86 = vector.load %arg19[%c0_51, %c0_52] : memref<1x64xf32, #tpu.memory_space<vmem>>, vector<1x64xf32>
    %cst_53 = arith.constant dense<0.000000e+00> : vector<8xf32>
    %87 = vector.multi_reduction <add>, %84, %cst_53 [1] : vector<8x64xf32> to vector<8xf32>
    %88 = vector.shape_cast %87 : vector<8xf32> to vector<8x1xf32>
    %cst_54 = arith.constant 6.400000e+01 : f32
    %89 = vector.broadcast %cst_54 : f32 to vector<8x1xf32>
    %90 = arith.divf %88, %89 : vector<8x1xf32>
    %91 = vector.broadcast %90 : vector<8x1xf32> to vector<8x64xf32>
    %92 = arith.subf %84, %91 : vector<8x64xf32>
    %93 = arith.mulf %92, %92 : vector<8x64xf32>
    %cst_55 = arith.constant dense<0.000000e+00> : vector<8xf32>
    %94 = vector.multi_reduction <add>, %93, %cst_55 [1] : vector<8x64xf32> to vector<8xf32>
    %95 = vector.shape_cast %94 : vector<8xf32> to vector<8x1xf32>
    %cst_56 = arith.constant 6.400000e+01 : f32
    %96 = vector.broadcast %cst_56 : f32 to vector<8x1xf32>
    %97 = arith.divf %95, %96 : vector<8x1xf32>
    %98 = vector.broadcast %90 : vector<8x1xf32> to vector<8x64xf32>
    %99 = arith.subf %84, %98 : vector<8x64xf32>
    %cst_57 = arith.constant 9.99999974E-6 : f32
    %100 = vector.broadcast %cst_57 : f32 to vector<8x1xf32>
    %101 = arith.addf %97, %100 : vector<8x1xf32>
    %102 = math.rsqrt %101 : vector<8x1xf32>
    %103 = vector.broadcast %102 : vector<8x1xf32> to vector<8x64xf32>
    %104 = arith.mulf %99, %103 : vector<8x64xf32>
    %105 = vector.broadcast %85 : vector<1x64xf32> to vector<8x64xf32>
    %106 = arith.mulf %104, %105 : vector<8x64xf32>
    %107 = vector.broadcast %86 : vector<1x64xf32> to vector<8x64xf32>
    %108 = arith.addf %106, %107 : vector<8x64xf32>
    %c0_58 = arith.constant 0 : index
    %c0_59 = arith.constant 0 : index
    %c0_60 = arith.constant 0 : index
    %109 = vector.load %arg20[%c0_58, %c0_59, %c0_60] : memref<1x8x64xf32, #tpu.memory_space<vmem>>, vector<1x8x64xf32>
    %110 = vector.shape_cast %109 : vector<1x8x64xf32> to vector<8x64xf32>
    %111 = vector.shape_cast %108 : vector<8x64xf32> to vector<1x8x64xf32>
    tpu.vector_store %arg20[%c0_58, %c0_59, %c0_60], %111 {strides = array<i32>} : memref<1x8x64xf32, #tpu.memory_space<vmem>>, vector<1x8x64xf32>,
    return
  }
  func.func @transform_0(%arg0: i32, %arg1: i32) -> (i32, i32, i32) {
    %c0_i32 = arith.constant 0 : i32
    %c0_i32_0 = arith.constant 0 : i32
    return %arg0, %arg1, %c0_i32 : i32, i32, i32
  }
  func.func @transform_1(%arg0: i32, %arg1: i32) -> (i32, i32, i32) {
    %c0_i32 = arith.constant 0 : i32
    %c0_i32_0 = arith.constant 0 : i32
    %c0_i32_1 = arith.constant 0 : i32
    return %arg0, %c0_i32, %c0_i32_0 : i32, i32, i32
  }
  func.func @transform_2(%arg0: i32, %arg1: i32) -> (i32, i32) {
    %c0_i32 = arith.constant 0 : i32
    %c0_i32_0 = arith.constant 0 : i32
    %c0_i32_1 = arith.constant 0 : i32
    return %c0_i32, %c0_i32_0 : i32, i32
  }
  func.func @transform_3(%arg0: i32, %arg1: i32) -> (i32, i32) {
    %c0_i32 = arith.constant 0 : i32
    %c0_i32_0 = arith.constant 0 : i32
    %c0_i32_1 = arith.constant 0 : i32
    return %c0_i32, %c0_i32_0 : i32, i32
  }
  func.func @transform_4(%arg0: i32, %arg1: i32) -> (i32, i32) {
    %c0_i32 = arith.constant 0 : i32
    %c0_i32_0 = arith.constant 0 : i32
    %c0_i32_1 = arith.constant 0 : i32
    return %c0_i32, %c0_i32_0 : i32, i32
  }
  func.func @transform_5(%arg0: i32, %arg1: i32) -> (i32, i32) {
    %c0_i32 = arith.constant 0 : i32
    %c0_i32_0 = arith.constant 0 : i32
    %c0_i32_1 = arith.constant 0 : i32
    return %c0_i32, %c0_i32_0 : i32, i32
  }
  func.func @transform_6(%arg0: i32, %arg1: i32) -> (i32, i32) {
    %c0_i32 = arith.constant 0 : i32
    %c0_i32_0 = arith.constant 0 : i32
    %c0_i32_1 = arith.constant 0 : i32
    return %c0_i32, %c0_i32_0 : i32, i32
  }
  func.func @transform_7(%arg0: i32, %arg1: i32) -> (i32, i32) {
    %c0_i32 = arith.constant 0 : i32
    %c0_i32_0 = arith.constant 0 : i32
    %c0_i32_1 = arith.constant 0 : i32
    return %c0_i32, %c0_i32_0 : i32, i32
  }
  func.func @transform_8(%arg0: i32, %arg1: i32) -> (i32, i32) {
    %c0_i32 = arith.constant 0 : i32
    %c0_i32_0 = arith.constant 0 : i32
    %c0_i32_1 = arith.constant 0 : i32
    return %c0_i32, %c0_i32_0 : i32, i32
  }
  func.func @transform_9(%arg0: i32, %arg1: i32) -> (i32, i32) {
    %c0_i32 = arith.constant 0 : i32
    %c0_i32_0 = arith.constant 0 : i32
    %c0_i32_1 = arith.constant 0 : i32
    return %c0_i32, %c0_i32_0 : i32, i32
  }
  func.func @transform_10(%arg0: i32, %arg1: i32) -> (i32, i32) {
    %c0_i32 = arith.constant 0 : i32
    %c0_i32_0 = arith.constant 0 : i32
    %c0_i32_1 = arith.constant 0 : i32
    return %c0_i32, %c0_i32_0 : i32, i32
  }
  func.func @transform_11(%arg0: i32, %arg1: i32) -> (i32, i32) {
    %c0_i32 = arith.constant 0 : i32
    %c0_i32_0 = arith.constant 0 : i32
    %c0_i32_1 = arith.constant 0 : i32
    return %c0_i32, %c0_i32_0 : i32, i32
  }
  func.func @transform_12(%arg0: i32, %arg1: i32) -> (i32, i32) {
    %c0_i32 = arith.constant 0 : i32
    %c0_i32_0 = arith.constant 0 : i32
    %c0_i32_1 = arith.constant 0 : i32
    return %c0_i32, %c0_i32_0 : i32, i32
  }
  func.func @transform_13(%arg0: i32, %arg1: i32) -> (i32, i32) {
    %c0_i32 = arith.constant 0 : i32
    %c0_i32_0 = arith.constant 0 : i32
    %c0_i32_1 = arith.constant 0 : i32
    return %c0_i32, %c0_i32_0 : i32, i32
  }
  func.func @transform_14(%arg0: i32, %arg1: i32) -> (i32, i32) {
    %c0_i32 = arith.constant 0 : i32
    %c0_i32_0 = arith.constant 0 : i32
    %c0_i32_1 = arith.constant 0 : i32
    return %c0_i32, %c0_i32_0 : i32, i32
  }
  func.func @transform_15(%arg0: i32, %arg1: i32) -> (i32, i32) {
    %c0_i32 = arith.constant 0 : i32
    %c0_i32_0 = arith.constant 0 : i32
    %c0_i32_1 = arith.constant 0 : i32
    return %c0_i32, %c0_i32_0 : i32, i32
  }
  func.func @transform_16(%arg0: i32, %arg1: i32) -> (i32, i32) {
    %c0_i32 = arith.constant 0 : i32
    %c0_i32_0 = arith.constant 0 : i32
    %c0_i32_1 = arith.constant 0 : i32
    return %c0_i32, %c0_i32_0 : i32, i32
  }
  func.func @transform_17(%arg0: i32, %arg1: i32) -> (i32, i32) {
    %c0_i32 = arith.constant 0 : i32
    %c0_i32_0 = arith.constant 0 : i32
    %c0_i32_1 = arith.constant 0 : i32
    return %c0_i32, %c0_i32_0 : i32, i32
  }
  func.func @transform_18(%arg0: i32, %arg1: i32) -> (i32, i32, i32) {
    %c0_i32 = arith.constant 0 : i32
    %c0_i32_0 = arith.constant 0 : i32
    return %arg0, %arg1, %c0_i32 : i32, i32, i32
  }
}

</mosaic_0001>

<bundles_post_ra>
// kernel: tpu_custom_call.1
= control target key start
LH: loop header
LB: loop body
LE: loop exit
PB: predicated region body
PF: predicated region fallthrough
CT: control target
= control target key end

     0   :  { %s5076_s0 = inlined_call_operand.hbm [shape: f32[2,8,64], index: 0, kind: input, shape index: {}]   ;;  %s5077_s1 = inlined_call_operand.hbm [shape: f32[2,16,64], index: 1, kind: input, shape index: {}]   ;;  %s5078_s2 = inlined_call_operand.vmem [shape: f32[64,64], index: 2, kind: input, shape index: {}]   ;;  %s5079_s3 = inlined_call_operand.vmem [shape: f32[1,64], index: 3, kind: input, shape index: {}]   ;;  %s5080_s4 = inlined_call_operand.vmem [shape: f32[64,64], index: 4, kind: input, shape index: {}]   ;;  %s5081_s5 = inlined_call_operand.vmem [shape: f32[1,64], index: 5, kind: input, shape index: {}]   ;;  %s5082_s6 = inlined_call_operand.vmem [shape: f32[64,64], index: 6, kind: input, shape index: {}]   ;;  %s5083_s7 = inlined_call_operand.vmem [shape: f32[1,64], index: 7, kind: input, shape index: {}]   ;;  %s5084_s8 = inlined_call_operand.hbm [shape: f32[64,64], index: 8, kind: input, shape index: {}]   ;;  %s5085_s9 = inlined_call_operand.vmem [shape: f32[1,64], index: 9, kind: input, shape index: {}]   ;;  %s5086_s10 = inlined_call_operand.vmem [shape: f32[1,64], index: 10, kind: input, shape index: {}]   ;;  %s5087_s11 = inlined_call_operand.vmem [shape: f32[1,64], index: 11, kind: input, shape index: {}]   ;;  %s5088_s12 = inlined_call_operand.hbm [shape: f32[64,128], index: 12, kind: input, shape index: {}]   ;;  %s5089_s13 = inlined_call_operand.vmem [shape: f32[1,128], index: 13, kind: input, shape index: {}]   ;;  %s5090_s14 = inlined_call_operand.vmem [shape: f32[128,64], index: 14, kind: input, shape index: {}]   ;;  %s5091_s15 = inlined_call_operand.vmem [shape: f32[1,64], index: 15, kind: input, shape index: {}]   ;;  %s5092_s16 = inlined_call_operand.vmem [shape: f32[1,64], index: 16, kind: input, shape index: {}]   ;;  %s5093_s17 = inlined_call_operand.vmem [shape: f32[1,64], index: 17, kind: input, shape index: {}]   ;;  %s5094_s18 = inlined_call_operand.hbm [shape: f32[2,8,64], index: 18, kind: output, shape index: {}]  }
   0x1   :  { %5111 = sst [smem:[#allocation22_spill]] %s5076_s0 }
   0x2   :  { %5112 = sst [smem:[#allocation23_spill]] %s5077_s1 }
   0x3   :  { %5113 = sst [smem:[#allocation24_spill]] %s5078_s2 }
   0x4   :  { %5114 = sst [smem:[#allocation25_spill]] %s5084_s8 }
   0x5   :  { %5115 = sst [smem:[#allocation26_spill]] %s5088_s12 }
   0x6   :  { %5116 = sst [smem:[#allocation27_spill]] %s5089_s13 }
   0x7   :  { %5117 = sst [smem:[#allocation28_spill]] %s5090_s14 }
   0x8   :  { %5118 = sst [smem:[#allocation29_spill]] %s5091_s15 }
   0x9   :  { %5119 = sst [smem:[#allocation30_spill]] %s5092_s16 }
   0xa   :  { %5120 = sst [smem:[#allocation31_spill]] %s5093_s17 }
   0xb   :  { %5121 = sst [smem:[#allocation32_spill]] %s5094_s18 }
   0xc   :  { %23 = vsyncpa [#allocation3], 0 }
   0xd   :  { %25 = vsyncpa [#allocation3 + $0x1], 0 }
   0xe   :  { %26 = vsyncpa [#allocation6], 0 }
   0xf   :  { %28 = vsyncpa [#allocation6 + $0x1], 0 }
  0x10   :  { %29 = vsyncpa [#allocation9], 0 }
  0x11   :  { %30 = vsyncpa [#allocation4], 0 }
  0x12   :  { %32 = vsyncpa [#allocation4 + $0x1], 0  ;;  %s4380_s27 = smov 0   ;;  %s4382_s28 = smov 0  }
  0x13   :  { %s4384_s29 = smov 0   ;;  %s4386_s30 = smov 0  }
  0x14   :  { %s4388_s0 = smov 0   ;;  %s4390_s19 = smov 0  }
  0x15 LB: > { %5122 = sst [smem:[#allocation16_spill]] %s4237_s27  ;;  %s4411_s1 = sadd.s32 4294967295, %s4257_s19   ;;  %s4257_s19 = sphi %s4390_s19, %s38_s19   ;;  %s4253_s0 = sphi %s4388_s0, %s5167_s0   ;;  %s4249_s30 = sphi %s4386_s30, %s5166_s30   ;;  %s4245_s29 = sphi %s4384_s29, %s5162_s29   ;;  %s4241_s28 = sphi %s4382_s28, %s5165_s28   ;;  %s4237_s27 = sphi %s4380_s27, %s5164_s27  }
  0x16   : > { %5123 = sst [smem:[#allocation17_spill]] %s4245_s29  ;;  %s3353_s20 = sadd.s32 4294967294, %s4257_s19  }
  0x17   : > { %5124 = sst [smem:[#allocation18_spill]] %s4249_s30  ;;  %p72_p0 = scmp.ne.s32.totalorder %s4241_s28, %s4237_s27 }
  0x18   : > { %p5101_p1 = scmp.eq.s32.totalorder %s4411_s1, 0  ;;  %p466_p3 = scmp.eq.s32.totalorder %s3353_s20, 1 }
  0x19   : > { %p3354_p5 = scmp.ge.s32.totalorder %s4257_s19, 1  ;;  %p473_p7 = scmp.lt.s32.totalorder %s4257_s19, 3 }
  0x1a   : > { %p4420_p4 = por %p5101_p1, %p72_p0  ;;  %p4425_p6 = por %p466_p3, %p72_p0 }
  0x1b   : > { %p4430_p8 = pnand %p3354_p5, %p473_p7  ;;  %s4259_s23 = smov [#allocation7]  }
  0x1c   : > { %s5125_s21 = scalar_select %p4420_p4, 1, 0 }
  0x1d   : > { %s5126_s22 = scalar_select %p4425_p6, 1, 0 }
  0x1e   : > { %s503_s24 = sshll.u32 %s4259_s23, 4  ;;  %p3876_p9 = pneg %p4430_p8  ;;  %s4434_s24 = int_to_ptr.vmem [resolvable:$true] %s503_s24 }
  0x1f   : > { %5127 = sst [smem:[#allocation19_spill]] %s5126_s22  ;;  %s4260_s26 = smov [#allocation8]  }
  0x20   : > { %p4441_p11 = pnand %p3876_p9, %p5101_p1  ;;  %s525_s20 = sshll.u32 %s4260_s26, 4  ;;  %s4445_s20 = int_to_ptr.vmem [resolvable:$true] %s525_s20 }
  0x21   : > { %s5130_s8 = sld [smem:[#allocation25_spill]] }
  0x22   : > { %p4049_p13 = pneg %p4441_p11 }
  0x27   : > { %s4047_s23 = scalar_lea.hbm %s5130_s8, 1024 }
  0x28   : > { %p4048_p12 = scmp.ne.s32.totalorder %s5130_s8, %s4047_s23  ;;  %p4054_p5 = scmp.lt.u32.totalorder %s4047_s23, %s5130_s8 }
  0x2a   : > { %p4050_p0 = pnand %p4049_p13, %p4048_p12 }
  0x2c   : > { %p4051_p3 = pneg %p4050_p0 }
  0x2e   : > { %p4056_p7 = pnand %p4054_p5, %p4051_p3 }
  0x30   : > { %4059 = shalt.err (!%p4056_p7)
}
  0x31   : > { %s4060_s27 = scalar_lea.vmem %s4434_s24, 1024  ;;  %p4068_p2 = scmp.lt.s32.totalorder %s4434_s24, %s4434_s24 }
  0x32   : > { %p4061_p9 = scmp.ne.s32.totalorder %s4434_s24, %s4060_s27  ;;  %p4069_p12 = scmp.lt.s32.totalorder %s4060_s27, %s4060_s27 }
  0x34   : > { %p4063_p10 = pnand %p4061_p9, %p4049_p13  ;;  %p4070_p0 = por %p4069_p12, %p4068_p2 }
  0x36   : > { %p4064_p1 = pneg %p4063_p10 }
  0x38   : > { %p4071_p6 = pnand %p4070_p0, %p4064_p1 }
  0x3a   : > { %4074 = shalt.err (!%p4071_p6)
}
  0x3b   : > { %s5103_s16 = smov 128   ;;  %s5104_s17 = smov 8  }
  0x3c   : > { %3879 = dma.hbm_to_vmem [thread:$0]  (!%p4441_p11), %s5130_s8, 1024, %s4434_s24, [#allocation6], %s5103_s16, %s5103_s16, %s5104_s17  }
  0x3d   : > { %s5131_s12 = sld [smem:[#allocation26_spill]] }
  0x43   : > { %s4075_s23 = scalar_lea.hbm %s5131_s12, 1024 }
  0x44   : > { %p4076_p1 = scmp.ne.s32.totalorder %s5131_s12, %s4075_s23  ;;  %p4082_p10 = scmp.lt.u32.totalorder %s4075_s23, %s5131_s12 }
  0x46   : > { %p4078_p2 = pnand %p4076_p1, %p4049_p13 }
  0x48   : > { %p4079_p6 = pneg %p4078_p2 }
  0x4a   : > { %p4084_p3 = pnand %p4082_p10, %p4079_p6 }
  0x4c   : > { %4087 = shalt.err (!%p4084_p3)
}
  0x4d   : > { %s4088_s24 = scalar_lea.vmem %s4445_s20, 1024  ;;  %p4096_p12 = scmp.lt.s32.totalorder %s4445_s20, %s4445_s20 }
  0x4e   : > { %p4089_p5 = scmp.ne.s32.totalorder %s4445_s20, %s4088_s24  ;;  %p4097_p0 = scmp.lt.s32.totalorder %s4088_s24, %s4088_s24 }
  0x50   : > { %p4091_p7 = pnand %p4089_p5, %p4049_p13  ;;  %p4098_p1 = por %p4097_p0, %p4096_p12 }
  0x52   : > { %p4092_p9 = pneg %p4091_p7 }
  0x54   : > { %p4099_p2 = pnand %p4098_p1, %p4092_p9 }
  0x56   : > { %4102 = shalt.err (!%p4099_p2)
}
  0x57   : > { %3882 = dma.hbm_to_vmem [thread:$0]  (!%p4441_p11), %s5131_s12, 1024, %s4445_s20, [#allocation9], %s5103_s16, %s5103_s16, %s5104_s17  }
  0x58   : > { %s50_s15 = sadd.s32 1, %s4253_s0  ;;  %s59_s25 = sadd.s32 1, %s4245_s29 }
  0x59   : > { %p52_p13 = scmp.ge.s32.totalorder %s50_s15, 2  ;;  %p66_p6 = scmp.ne.s32.totalorder %s4245_s29, %s4241_s28 }
  0x5a   : > { %p67_p10 = scmp.eq.s32.totalorder %s4257_s19, 0  ;;  %p3896_p3 = scmp.lt.s32.totalorder %s4257_s19, 2 }
  0x5b   : > { %s5169_s15 = smov (%p52_p13, %s50_s15), 0  ;;  %p5133_p7 = scmp.eq.s32.totalorder %s4411_s1, 1 }
  0x5c   : > { %5132 = sst [smem:[#allocation20_spill]] %s5169_s15  ;;  %p68_p5 = por %p67_p10, %p66_p6 }
  0x5d   : > { %p4515_p9 = por %p5133_p7, %p66_p6  ;;  %s54_s30 = ssub.s32 %s4253_s0, %s5169_s15 }
  0x5e   : > { %s4522_s22 = sand.u32 1, %s4245_s29   ;;  %p57_p11 = scmp.eq.s32.totalorder %s54_s30, 0 }
  0x5f   : > { %s5134_s18 = scalar_select %p4515_p9, 1, 0 }
  0x60   : > { %s3358_s20 = sshll.u32 %s4522_s22, 3  ;;  %s3359_s26 = sshll.u32 %s4253_s0, 7 }
  0x61   : > { %s4527_s23 = scalar_select %p57_p11, %s4245_s29, %s59_s25  }
  0x62   : > { %s5136_s13 = sld [smem:[#allocation22_spill]]  ;;  %s558_s16 = scalar_lea.vmem [#allocation2], %s3358_s20 }
  0x63   : > { %5135 = sst [smem:[#allocation21_spill]] %s4527_s23  ;;  %s566_s17 = sshll.u32 %s558_s16, 4  ;;  %s4540_s17 = int_to_ptr.vmem [resolvable:$true] %s566_s17 }
  0x64   : > { %p4536_p12 = pnand %p3896_p3, %p68_p5  ;;  %s555_s30 = scalar_lea.sflag [#allocation3], %s4522_s22 }
  0x66   : > { %p4105_p1 = pneg %p4536_p12 }
  0x68   : > { %s4532_s14 = scalar_lea.hbm %s5136_s13, %s3359_s26  ;;  %s4108_s26 = scalar_lea.hbm %s5136_s13, 256 }
  0x69   : > { %s4103_s27 = scalar_lea.hbm %s4532_s14, 128  ;;  %p4109_p6 = scmp.lt.u32.totalorder %s4532_s14, %s5136_s13 }
  0x6a   : > { %p4104_p0 = scmp.ne.s32.totalorder %s4532_s14, %s4103_s27  ;;  %p4110_p10 = scmp.lt.u32.totalorder %s4108_s26, %s4103_s27 }
  0x6b   : > { %p4112_p5 = scmp.lt.u32.totalorder %s4103_s27, %s4532_s14 }
  0x6c   : > { %p4106_p2 = pnand %p4105_p1, %p4104_p0  ;;  %p4111_p3 = por %p4110_p10, %p4109_p6 }
  0x6e   : > { %p4107_p13 = pneg %p4106_p2  ;;  %p4113_p7 = por %p4112_p5, %p4111_p3 }
  0x70   : > { %p4114_p11 = pnand %p4113_p7, %p4107_p13 }
  0x72   : > { %4117 = shalt.err (!%p4114_p11)
}
  0x73   : > { %s4118_s25 = scalar_lea.vmem %s4540_s17, 128  ;;  %s4263_s16 = smov [#allocation2]  }
  0x74   : > { %p4119_p0 = scmp.ne.s32.totalorder %s4540_s17, %s4118_s25  ;;  %s4123_s20 = sshll.u32 %s4263_s16, 4  ;;  %s4124_s20 = int_to_ptr.vmem [resolvable:$false] %s4123_s20 }
  0x75   : > { %s4125_s12 = scalar_lea.vmem %s4124_s20, 256  ;;  %p4126_p4 = scmp.lt.s32.totalorder %s4540_s17, %s4124_s20 }
  0x76   : > { %p4121_p2 = pnand %p4119_p0, %p4105_p1  ;;  %p4127_p6 = scmp.lt.s32.totalorder %s4125_s12, %s4118_s25 }
  0x78   : > { %p4122_p9 = pneg %p4121_p2  ;;  %p4128_p10 = por %p4127_p6, %p4126_p4 }
  0x7a   : > { %p4129_p3 = pnand %p4128_p10, %p4122_p9 }
  0x7c   : > { %4132 = shalt.err (!%p4129_p3)
}
  0x7d   : > { %3886 = dma.hbm_to_vmem [thread:$0]  (!%p4536_p12), %s4532_s14, 128, %s4540_s17, %s555_s30  }
  0x7e   : > { %s3415_s27 = sshll.u32 %s4253_s0, 8  ;;  %s5138_s26 = sshll.u32 %s4522_s22, 4 }
  0x7f   : > { %s577_s24 = scalar_lea.vmem [#allocation5], %s5138_s26  ;;  %s573_s20 = sand.u32 1, %s4257_s19  }
  0x80   : > { %s584_s16 = sshll.u32 %s577_s24, 4  ;;  %s5139_s13 = sld [smem:[#allocation23_spill]]  ;;  %s4572_s16 = int_to_ptr.vmem [resolvable:$true] %s584_s16 }
  0x81   : > { %s4580_s23 = scalar_lea.sflag [#allocation6], %s573_s20 }
  0x86   : > { %s4578_s15 = scalar_lea.hbm %s5139_s13, %s3415_s27  ;;  %s4138_s14 = scalar_lea.hbm %s5139_s13, 512 }
  0x87   : > { %s4133_s29 = scalar_lea.hbm %s4578_s15, 256  ;;  %p4139_p5 = scmp.lt.u32.totalorder %s4578_s15, %s5139_s13 }
  0x88   : > { %p4134_p4 = scmp.ne.s32.totalorder %s4578_s15, %s4133_s29  ;;  %p4140_p7 = scmp.lt.u32.totalorder %s4138_s14, %s4133_s29 }
  0x89   : > { %p4142_p0 = scmp.lt.u32.totalorder %s4133_s29, %s4578_s15 }
  0x8a   : > { %p4136_p9 = pnand %p4134_p4, %p4105_p1  ;;  %p4141_p11 = por %p4140_p7, %p4139_p5 }
  0x8c   : > { %p4137_p13 = pneg %p4136_p9  ;;  %p4143_p2 = por %p4142_p0, %p4141_p11 }
  0x8e   : > { %p4144_p6 = pnand %p4143_p2, %p4137_p13 }
  0x90   : > { %4147 = shalt.err (!%p4144_p6)
}
  0x91   : > { %s4148_s27 = scalar_lea.vmem %s4572_s16, 256  ;;  %s4264_s24 = smov [#allocation5]  }
  0x92   : > { %p4149_p10 = scmp.ne.s32.totalorder %s4572_s16, %s4148_s27  ;;  %s4153_s20 = sshll.u32 %s4264_s24, 4  ;;  %s4154_s20 = int_to_ptr.vmem [resolvable:$false] %s4153_s20 }
  0x93   : > { %s4155_s25 = scalar_lea.vmem %s4154_s20, 512  ;;  %p4156_p9 = scmp.lt.s32.totalorder %s4572_s16, %s4154_s20 }
  0x94   : > { %p4151_p3 = pnand %p4149_p10, %p4105_p1  ;;  %p4157_p5 = scmp.lt.s32.totalorder %s4155_s25, %s4148_s27 }
  0x96   : > { %p4152_p4 = pneg %p4151_p3  ;;  %p4158_p7 = por %p4157_p5, %p4156_p9 }
  0x98   : > { %p4159_p11 = pnand %p4158_p7, %p4152_p4 }
  0x9a   : > { %4162 = shalt.err (!%p4159_p11)
}
  0x9b   : > { %s5140_s29 = smov 8   ;;  %s5141_s12 = smov 128  }
  0x9c   : > { %3889 = dma.hbm_to_vmem [thread:$0]  (!%p4536_p12), %s4578_s15, 256, %s4572_s16, %s4580_s23, %s5141_s12, %s5141_s12, %s5140_s29  }
  0x9d   : > { %596 = sbr.rel (%p4430_p8) target bundleno = 2753 (0xac1), region = 92  ;;  %s4612_s17 = sand.u32 (!%p4430_p8), 1, %s4241_s28  }
  0x9e   : > { %s5110_s22 = sshll.u32 (!%p4430_p8), %s4612_s17, 3  ;;  %s599_s14 = scalar_lea.sflag (!%p4430_p8), [#allocation3], %s4612_s17 }
  0x9f   : > { %s4618_s8 = scalar_lea.vmem (!%p4430_p8), [#allocation2], %s5110_s22  ;;  %p5142_p1 = scmp.ne.s32.totalorder (!%p4430_p8), %s5125_s21, 0 }
  0xa4   : > { %4216 = dma.done.wait (%p5142_p1), %s599_s14, 128  }
  0xa5   : > { %4218 = vsyncadd (%p5142_p1), %s599_s14, 4294967168  ;;  %s607_s2 = sand.u32 1, %s4411_s1   ;;  %s3365_s15 = sshll.u32 %s4612_s17, 4 }
  0xa6   : > { %s608_s23 = scalar_lea.sflag [#allocation6], %s607_s2  ;;  %s4626_s16 = scalar_lea.vmem [#allocation5], %s3365_s15 }
  0xa7   : > { %4220 = dma.done.wait (%p5142_p1), %s608_s23, 256  }
  0xa8   : > { %4222 = vsyncadd (%p5142_p1), %s608_s23, 4294967040  ;;  %p5143_p8 = scmp.eq.s32.totalorder %s4411_s1, 0 }
  0xaa   : > { %4224 = dma.done.wait (%p5143_p8), [#allocation6], 1024   ;;  %p5144_p12 = pmov %p5143_p8 }
  0xab   : > { %p5145_p13 = pmov %p5143_p8 }
  0xac   : > { %4226 = vsyncadd (%p5144_p12), [#allocation6], 4294966272 }
  0xad   : > { %4228 = dma.done.wait (%p5145_p13), [#allocation9], 1024   ;;  %p5146_p0 = pmov %p5143_p8 }
  0xae   : > { %v4265_v0 = vmov 0.0|0.0   ;;  %vm4266_vm0 = vmmov 0   ;;  %v4267_v1 = vmov 0.0   ;;  %s5147_s26 = sld [smem:[#allocation24_spill]]  ;;  %vm695_vm1 = vcmask 523264   ;;  %v678_v10 = vld [vmem:[%s4626_s16] sm:$0xff] }
  0xaf   : > { %4230 = vsyncadd (%p5146_p0), [#allocation9], 4294966272  ;;  %3746 = vmatprep.subr.bf16.mxu1 %v4265_v0  ;;  %3536 = vmatprep.mubr.msk.f32.mxu1 %vm4266_vm0, %v4267_v1  ;;  %v769_v14 = vld [vmem:[%s5080_s4] sm:$0xff]  ;;  %v770_v15 = vld [vmem:[%s5080_s4 + $0x8] sm:$0xff]  ;;  %s4268_s12 = smov 112   ;;  %s4270_s14 = smov 96  }
  0xb0   : > { %3574 = vmatprep.mubr.msk.f32.mxu0 %vm695_vm1, %v678_v10  ;;  %v3758_v17 = vpack.c.bf16 %v770_v15, %v769_v14  ;;  %v771_v18 = vld [vmem:[%s5080_s4 + $0x10] sm:$0xff]  ;;  %v772_v19 = vld [vmem:[%s5080_s4 + $0x18] sm:$0xff]  ;;  %v677_v20 = vld [vmem:[%s4618_s8] sm:$0xff]  ;;  %s4271_s2 = smov 104   ;;  %s4272_s21 = smov 88   ;;  %vm1314_vm2 = vcmask 64512  }
  0xb1   : > { %v3762_v21 = vpack.c.bf16 %v772_v19, %v771_v18  ;;  %v773_v22 = vld [vmem:[%s5080_s4 + $0x20] sm:$0xff]  ;;  %v774_v23 = vld [vmem:[%s5080_s4 + $0x28] sm:$0xff]  ;;  %v775_v25 = vld [vmem:[%s5080_s4 + $0x30] sm:$0xff]  ;;  %s4273_s30 = smov 80   ;;  %s4274_s27 = smov 72   ;;  %vm1891_vm3 = vcmask 130048  }
  0xb2   : > { %v3766_v24 = vpack.c.bf16 %v774_v23, %v773_v22  ;;  %v776_v26 = vld [vmem:[%s5080_s4 + $0x38] sm:$0xff]  ;;  %v3369_v29 = vld [vmem:[%s5079_s3] ss:$0 sm:$0xff]  ;;  %v866_v39 = vld [vmem:[%s5082_s6 + $0x8] sm:$0xff]  ;;  %vm2866_vm4 = vcmask 195584   ;;  %vm2868_vm5 = vcmask 261120  }
  0xb3   : > { %v3770_v27 = vpack.c.bf16 %v776_v26, %v775_v25  ;;  %v679_v28 = vld [vmem:[%s4626_s16 + $0x8] sm:$0xff]  ;;  %s4269_s16 = smov 120   ;;  %v3371_v33 = vld [vmem:[%s5081_s5] ss:$0 sm:$0xff]  ;;  %v867_v41 = vld [vmem:[%s5082_s6 + $0x10] sm:$0xff]  ;;  %vm2870_vm6 = vcmask 326656  }
  0xb4   : > { %v680_v2 = vld [vmem:[%s5147_s26] sm:$0xff]  ;;  %v681_v3 = vld [vmem:[%s5147_s26 + $0x8] sm:$0xff]  ;;  %v682_v4 = vld [vmem:[%s5147_s26 + $0x10] sm:$0xff]  ;;  %vm2872_vm7 = vcmask 392192   ;;  %vm2874_vm8 = vcmask 457728   ;;  %s5148_s20 = sld [smem:[#allocation28_spill]] }
  0xb5   : > { %v3747_v5 = vpack.c.bf16 %v681_v3, %v680_v2  ;;  %v683_v6 = vld [vmem:[%s5147_s26 + $0x18] sm:$0xff]  ;;  %v684_v8 = vld [vmem:[%s5147_s26 + $0x20] sm:$0xff]  ;;  %v685_v9 = vld [vmem:[%s5147_s26 + $0x28] sm:$0xff]  ;;  %s5153_s15 = sld [smem:[#allocation31_spill]]  ;;  %s5154_s24 = sshll.u32 %s4612_s17, 3 }
  0xb6   : > { %v3750_v7 = vpack.c.bf16 %v683_v6, %v682_v4  ;;  %v3753_v11 = vpack.c.bf16 %v685_v9, %v684_v8  ;;  %v686_v12 = vld [vmem:[%s5147_s26 + $0x30] sm:$0xff]  ;;  %v687_v13 = vld [vmem:[%s5147_s26 + $0x38] sm:$0xff]  ;;  %v865_v38 = vld [vmem:[%s5082_s6] sm:$0xff]  ;;  %s3216_s1 = scalar_lea.sflag [#allocation4], %s4612_s17  ;;  %p5156_p6 = scmp.ne.s32.totalorder %s5134_s18, 0 }
  0xb7   : > { %3748 = vmatpush3.bf16.msra.mxu1 %v3747_v5  ;;  %v3756_v16 = vpack.c.bf16 %v687_v13, %v686_v12  ;;  %v3774_v40 = vpack.c.bf16 %v866_v39, %v865_v38  ;;  %v868_v42 = vld [vmem:[%s5082_s6 + $0x18] sm:$0xff]  ;;  %v869_v44 = vld [vmem:[%s5082_s6 + $0x20] sm:$0xff]  ;;  %v870_v45 = vld [vmem:[%s5082_s6 + $0x28] sm:$0xff] }
  0xb8   : > { %3749 = vmatprep.subr.bf16.mxu1 %v4265_v0  ;;  %v3778_v43 = vpack.c.bf16 %v868_v42, %v867_v41  ;;  %v3782_v46 = vpack.c.bf16 %v870_v45, %v869_v44  ;;  %v871_v47 = vld [vmem:[%s5082_s6 + $0x30] sm:$0xff]  ;;  %v872_v48 = vld [vmem:[%s5082_s6 + $0x38] sm:$0xff]  ;;  %v3374_v9 = vld [vmem:[%s5083_s7] ss:$0 sm:$0xff] }
  0xb9   : > { %3775 = vmatprep.subr.bf16.mxu0 %v3774_v40  ;;  %v3786_v49 = vpack.c.bf16 %v872_v48, %v871_v47 }
  0xba   : > { %3777 = vmatpush3.bf16.msra.mxu0 %v3774_v40 }
  0xbb   : > { %3751 = vmatpush3.bf16.msra.mxu1 %v3750_v7  ;;  %3779 = vmatprep.subr.bf16.mxu0 %v3778_v43 }
  0xbc   : > { %3752 = vmatprep.subr.bf16.mxu1 %v4265_v0 }
  0xbe   : > { %3781 = vmatpush3.bf16.msra.mxu0 %v3778_v43 }
  0xbf   : > { %3754 = vmatpush3.bf16.msra.mxu1 %v3753_v11  ;;  %3783 = vmatprep.subr.bf16.mxu0 %v3782_v46 }
  0xc0   : > { %3755 = vmatprep.subr.bf16.mxu1 %v4265_v0 }
  0xc2   : > { %3785 = vmatpush3.bf16.msra.mxu0 %v3782_v46 }
  0xc3   : > { %3757 = vmatpush3.bf16.msra.mxu1 %v3756_v16  ;;  %3787 = vmatprep.subr.bf16.mxu0 %v3786_v49 }
  0xc4   : > { %3759 = vmatprep.subr.bf16.mxu1 %v3758_v17 }
  0xc6   : > { %3537 = vmatmul.mubr.msk.f32.vlgmr.msra.gmra.mrb[0].mxu1 %vm695_vm1, %v677_v20  ;;  %3789 = vmatpush3.bf16.msra.mxu0 %v3786_v49 }
  0xc7   : > { %3761 = vmatpush3.bf16.msra.mxu1 %v3758_v17  ;;  %3555 = vmatprep.mubr.msk.f32.mxu1 %vm695_vm1, %v678_v10 }
  0xc8   : > { %3763 = vmatprep.subr.bf16.mxu1 %v3762_v21  ;;  %3597 = vmatprep.subr.mxu0 %v4267_v1 }
  0xc9   : > { %3575 = vmatmul.mubr.msk.f32.vlgmr.msra.gmra.mrb[0].mxu0 %vm695_vm1, %v679_v28 }
  0xca   : > { %3599 = vmatprep.mubr.msk.f32.mxu0 %vm4266_vm0, %v4267_v1 }
  0xcb   : > { %3765 = vmatpush3.bf16.msra.mxu1 %v3762_v21 }
  0xcc   : > { %3767 = vmatprep.subr.bf16.mxu1 %v3766_v24 }
  0xcf   : > { %3769 = vmatpush3.bf16.msra.mxu1 %v3766_v24 }
  0xd0   : > { %3771 = vmatprep.subr.bf16.mxu1 %v3770_v27 }
  0xd3   : > { %3773 = vmatpush3.bf16.msra.mxu1 %v3770_v27 }
  0xd4   : > { %3577 = vmatprep.subr.mxu1 %v4267_v1 }
  0xd6   : > { %3556 = vmatmul.mubr.msk.f32.vlgmr.msra.gmra.mrb[2].mxu1 %vm695_vm1, %v679_v28 }
  0xd7   : > { %3579 = vmatprep.mubr.msk.f32.mxu1 %vm4266_vm0, %v4267_v1 }
 0x199   : > { %v765_v30 = vpop.f32.mrb[0].mxu1 }
 0x19a   : > { %v4707_v31 = vadd.f32 %v3369_v29, %v765_v30  ;;  %v3538_v32 = vpop.f32.mrb[1].mxu1 }
 0x19c   : > { %958 = vrot.lane.b32.xlu1 %v4707_v31, %s4268_s12  ;;  %956 = vrot.lane.b32.xlu0 %v4707_v31, %s4269_s16  ;;  %v3576_v10 = vpop.f32.mrb[0].mxu0 }
 0x19d   : > { %v952_v11 = vadd.f32 %v3576_v10, %v3374_v9  ;;  %v946_v12 = vpop.f32.mrb[1].mxu0 }
 0x19e   : > { %v947_v13 = vadd.f32 %v3374_v9, %v946_v12 }
 0x1a0   : > { %962 = vrot.lane.b32.xlu1 %v4707_v31, %s4270_s14  ;;  %960 = vrot.lane.b32.xlu0 %v4707_v31, %s4271_s2  ;;  %v4780_v14 = vpack.i.bf16 %v952_v11, %v947_v13  ;;  %v3791_v23 = vpack.c.bf16 %v952_v11, %v947_v13 }
 0x1a9   : > { %v3557_v34 = vpop.f32.mrb[2].mxu1 }
 0x1aa   : > { %v862_v35 = vadd.f32 %v3557_v34, %v3371_v33  ;;  %v856_v36 = vpop.f32.mrb[3].mxu1 }
 0x1ab   : > { %v857_v37 = vadd.f32 %v3371_v33, %v856_v36 }
 0x1ac   : > { %980 = vrot.lane.b32.xlu1 %v862_v35, %s4268_s12  ;;  %974 = vrot.lane.b32.xlu0 %v862_v35, %s4269_s16 }
 0x1b0   : > { %986 = vrot.lane.b32.xlu1 %v862_v35, %s4271_s2  ;;  %992 = vrot.lane.b32.xlu0 %v862_v35, %s4270_s14 }
 0x1b4   : > { %998 = vrot.lane.b32.xlu1 %v862_v35, %s4272_s21  ;;  %1004 = vrot.lane.b32.xlu0 %v862_v35, %s4273_s30 }
 0x1b8   : > { %1010 = vrot.lane.b32.xlu1 %v862_v35, %s4274_s27  ;;  %972 = vrot.lane.b32.xlu0 %v857_v37, %s4269_s16 }
 0x1bc   : > { %966 = vrot.lane.b32.xlu1 %v4707_v31, %s4273_s30  ;;  %964 = vrot.lane.b32.xlu0 %v4707_v31, %s4272_s21 }
 0x1c0   : > { %978 = vrot.lane.b32.xlu1 %v857_v37, %s4268_s12  ;;  %984 = vrot.lane.b32.xlu0 %v857_v37, %s4271_s2 }
 0x1c4   : > { %996 = vrot.lane.b32.xlu1 %v857_v37, %s4272_s21  ;;  %990 = vrot.lane.b32.xlu0 %v857_v37, %s4270_s14 }
 0x1c8   : > { %1008 = vrot.lane.b32.xlu1 %v857_v37, %s4274_s27  ;;  %1002 = vrot.lane.b32.xlu0 %v857_v37, %s4273_s30 }
 0x1cc   : > { %968 = vrot.lane.b32.xlu0 %v4707_v31, %s4274_s27 }
 0x1f1   : > { %1058 = vxpose.xlu1.b32.start [1/2] (short) (narrow) %v857_v37, 8 }
 0x1f5   : > { %1059 = vxpose.xlu1.b32.end [2/2] (short) (narrow) %v862_v35, 8 }
 0x20e   : > { %v959_v50 = vpop.permute.xlu1 %958  ;;  %v957_v51 = vpop.permute.xlu0 %956 }
 0x212   : > { %v4768_v52 = vpop.permute.xlu1 %962  ;;  %v961_v53 = vpop.permute.xlu0 %960 }
 0x21e   : > { %v981_v54 = vpop.permute.xlu1 %980  ;;  %v975_v55 = vpop.permute.xlu0 %974 }
 0x222   : > { %v987_v56 = vpop.permute.xlu1 %986  ;;  %v993_v57 = vpop.permute.xlu0 %992 }
 0x226   : > { %v999_v58 = vpop.permute.xlu1 %998  ;;  %v1005_v59 = vpop.permute.xlu0 %1004 }
 0x22a   : > { %v1011_v60 = vpop.permute.xlu1 %1010  ;;  %v973_v61 = vpop.permute.xlu0 %972 }
 0x22b   : > { %1090 = vxpose.xlu0.b32.start [1/2] (short) (narrow) %v973_v61, 8 }
 0x22e   : > { %v4770_v62 = vpop.permute.xlu1 %966  ;;  %v965_v63 = vpop.permute.xlu0 %964 }
 0x22f   : > { %1091 = vxpose.xlu0.b32.end [2/2] (short) (narrow) %v975_v55, 8 }
 0x232   : > { %v979_v2 = vpop.permute.xlu1 %978  ;;  %v985_v3 = vpop.permute.xlu0 %984 }
 0x233   : > { %1122 = vxpose.xlu0.b32.start [1/2] (short) (narrow) %v979_v2, 8  ;;  %1154 = vxpose.xlu1.b32.start [1/2] (short) (narrow) %v985_v3, 8 }
 0x236   : > { %v997_v4 = vpop.permute.xlu1 %996  ;;  %v991_v5 = vpop.permute.xlu0 %990 }
 0x237   : > { %1123 = vxpose.xlu0.b32.end [2/2] (short) (narrow) %v981_v54, 8  ;;  %1155 = vxpose.xlu1.b32.end [2/2] (short) (narrow) %v987_v56, 8 }
 0x23a   : > { %v1009_v6 = vpop.permute.xlu1 %1008  ;;  %v1003_v7 = vpop.permute.xlu0 %1002 }
 0x23b   : > { %1218 = vxpose.xlu1.b32.start [1/2] (short) (narrow) %v997_v4, 8  ;;  %1186 = vxpose.xlu0.b32.start [1/2] (short) (narrow) %v991_v5, 8 }
 0x23e   : > { %v969_v15 = vpop.permute.xlu0 %968 }
 0x23f   : > { %1219 = vxpose.xlu1.b32.end [2/2] (short) (narrow) %v999_v58, 8  ;;  %1187 = vxpose.xlu0.b32.end [2/2] (short) (narrow) %v993_v57, 8 }
 0x243   : > { %1282 = vxpose.xlu1.b32.start [1/2] (short) (narrow) %v1009_v6, 8  ;;  %1250 = vxpose.xlu0.b32.start [1/2] (short) (narrow) %v1003_v7, 8 }
 0x247   : > { %1283 = vxpose.xlu1.b32.end [2/2] (short) (narrow) %v1011_v60, 8  ;;  %1251 = vxpose.xlu0.b32.end [2/2] (short) (narrow) %v1005_v59, 8 }
 0x265   : > { %3977 = vrot.lane.b32.xlu1 %v4780_v14, %s4268_s12  ;;  %s4277_s12 = smov 16  }
 0x269   : > { %3982 = vrot.lane.b32.xlu1 %v4780_v14, %s4271_s2  ;;  %s4280_s2 = smov 40  }
 0x26d   : > { %3992 = vrot.lane.b32.xlu1 %v4780_v14, %s4272_s21  ;;  %s4281_s21 = smov 32  }
 0x270   : > { %3972 = vrot.lane.b32.xlu0 %v4780_v14, %s4269_s16  ;;  %s4278_s16 = smov 8  }
 0x271   : > { %v1074_v8 = vpop.trf.xlu1 }
 0x272   : > { %3578 = vmatpush3.msra.mxu1 %v1074_v8 }
 0x273   : > { %3580 = vmatmul.mubr.msk.f32.vlgmr.msra.gmra.mrb[4].mxu1 %vm1314_vm2, %v4707_v31  ;;  %3582 = vmatprep.subr.mxu1 %v4267_v1 }
 0x274   : > { %3584 = vmatprep.mubr.msk.f32.mxu1 %vm4266_vm0, %v4267_v1  ;;  %3987 = vrot.lane.b32.xlu0 %v4780_v14, %s4270_s14  ;;  %s4279_s14 = smov 24  }
 0x2ab   : > { %v1106_v16 = vpop.trf.xlu0 }
 0x2ac   : > { %3583 = vmatpush3.msra.mxu1 %v1106_v16 }
 0x2ad   : > { %3585 = vmatmul.mubr.msk.f32.vlgmr.msra.gmra.mrb[6].mxu1 %vm1314_vm2, %v957_v51  ;;  %3587 = vmatprep.subr.mxu1 %v4267_v1 }
 0x2ae   : > { %3589 = vmatprep.mubr.msk.f32.mxu1 %vm4266_vm0, %v4267_v1 }
 0x2b3   : > { %v1138_v17 = vpop.trf.xlu0  ;;  %v1170_v18 = vpop.trf.xlu1 }
 0x2b4   : > { %3588 = vmatpush3.msra.mxu1 %v1138_v17 }
 0x2b5   : > { %3590 = vmatmul.mubr.msk.f32.vlgmr.msra.gmra.mrb[8].mxu1 %vm1314_vm2, %v959_v50  ;;  %3592 = vmatprep.subr.mxu1 %v4267_v1 }
 0x2b6   : > { %3593 = vmatpush3.msra.mxu1 %v1170_v18  ;;  %3594 = vmatprep.mubr.msk.f32.mxu1 %vm4266_vm0, %v4267_v1 }
 0x2b7   : > { %3602 = vmatprep.subr.mxu1 %v4267_v1 }
 0x2b9   : > { %3595 = vmatmul.mubr.msk.f32.vlgmr.msra.gmra.mrb[10].mxu1 %vm1314_vm2, %v961_v53 }
 0x2ba   : > { %3604 = vmatprep.mubr.msk.f32.mxu1 %vm4266_vm0, %v4267_v1 }
 0x2bb   : > { %v1234_v19 = vpop.trf.xlu1  ;;  %v1202_v20 = vpop.trf.xlu0 }
 0x2bc   : > { %3598 = vmatpush3.msra.mxu0 %v1202_v20  ;;  %3603 = vmatpush3.msra.mxu1 %v1234_v19 }
 0x2bd   : > { %3600 = vmatmul.mubr.msk.f32.vlgmr.msra.gmra.mrb[2].mxu0 %vm1314_vm2, %v4768_v52  ;;  %3605 = vmatmul.mubr.msk.f32.vlgmr.msra.gmra.mrb[12].mxu1 %vm1314_vm2, %v965_v63 }
 0x2be   : > { %3607 = vmatprep.subr.mxu0 %v4267_v1  ;;  %3612 = vmatprep.subr.mxu1 %v4267_v1 }
 0x2bf   : > { %3609 = vmatprep.mubr.msk.f32.mxu0 %vm4266_vm0, %v4267_v1  ;;  %3614 = vmatprep.mubr.msk.f32.mxu1 %vm4266_vm0, %v4267_v1 }
 0x2c3   : > { %v1298_v21 = vpop.trf.xlu1  ;;  %v1266_v22 = vpop.trf.xlu0 }
 0x2c4   : > { %3608 = vmatpush3.msra.mxu0 %v1266_v22  ;;  %3613 = vmatpush3.msra.mxu1 %v1298_v21 }
 0x2c5   : > { %3610 = vmatmul.mubr.msk.f32.vlgmr.msra.gmra.mrb[4].mxu0 %vm1314_vm2, %v4770_v62  ;;  %3615 = vmatmul.mubr.msk.f32.vlgmr.msra.gmra.mrb[14].mxu1 %vm1314_vm2, %v969_v15 }
 0x2c6   : > { %3790 = vmatprep.subr.bf16.mxu0 %v4265_v0  ;;  %3793 = vmatprep.subr.bf16.mxu1 %v4265_v0 }
 0x2c7   : > { %3621 = vmatprep.mubr.msk.f32.mxu0 %vm4266_vm0, %v4267_v1  ;;  %3628 = vmatprep.mubr.msk.f32.mxu1 %vm4266_vm0, %v4267_v1 }
 0x2c8   : > { %3792 = vmatpush3.bf16.msra.mxu0 %v3791_v23 }
 0x2c9   : > { %3796 = vmatprep.subr.bf16.mxu0 %v4265_v0 }
 0x2d7   : > { %v3978_v56 = vpop.permute.xlu1 %3977 }
 0x2d8   : > { %v3980_v57 = vunpack.i.h.bf16 %v3978_v56  ;;  %v3979_v58 = vunpack.i.l.bf16 %v3978_v56 }
 0x2da   : > { %v3797_v60 = vpack.c.bf16 %v3980_v57, %v3979_v58 }
 0x2db   : > { %v3983_v62 = vpop.permute.xlu1 %3982 }
 0x2dc   : > { %v3985_v5 = vunpack.i.h.bf16 %v3983_v62  ;;  %v3984_v6 = vunpack.i.l.bf16 %v3983_v62 }
 0x2de   : > { %v3800_v10 = vpack.c.bf16 %v3985_v5, %v3984_v6 }
 0x2df   : > { %v3993_v63 = vpop.permute.xlu1 %3992 }
 0x2e0   : > { %v3995_v21 = vunpack.i.h.bf16 %v3993_v63  ;;  %v3994_v22 = vunpack.i.l.bf16 %v3993_v63 }
 0x2e2   : > { %v3973_v24 = vpop.permute.xlu0 %3972 }
 0x2e3   : > { %v3975_v25 = vunpack.i.h.bf16 %v3973_v24  ;;  %v3974_v26 = vunpack.i.l.bf16 %v3973_v24 }
 0x2e5   : > { %v3794_v27 = vpack.c.bf16 %v3975_v25, %v3974_v26 }
 0x2e6   : > { %v4845_v52 = vpop.permute.xlu0 %3987 }
 0x2e7   : > { %3795 = vmatpush3.bf16.msra.mxu1 %v3794_v27 }
 0x2e8   : > { %3799 = vmatprep.subr.bf16.mxu1 %v4265_v0 }
 0x346   : > { %v1383_v28 = vpop.f32.mrb[4].mxu1 }
 0x347   : > { %v3581_v29 = vpop.f32.mrb[5].mxu1  ;;  %v1892_v30 = vsel %vm1891_vm3, %v1383_v28, -inf }
 0x348   : > { %1893 = vmax.xlane.f32.xlu0 %v1892_v30  ;;  %v3806_v29 = vpack.c.bf16 %v3995_v21, %v3994_v22  ;;  %v4276_v21 = vmov 1934713408  }
 0x349   : > { %v2631_v22 = vunpack.c.l.s4 %v4276_v21 }
 0x380   : > { %v1455_v31 = vpop.f32.mrb[6].mxu1 }
 0x381   : > { %v3586_v32 = vpop.f32.mrb[7].mxu1  ;;  %v1895_v33 = vsel %vm1891_vm3, %v1455_v31, -inf }
 0x382   : > { %1896 = vmax.xlane.f32.xlu1 %v1895_v33 }
 0x388   : > { %v4826_v34 = vpop.f32.mrb[8].mxu1 }
 0x389   : > { %v3591_v35 = vpop.f32.mrb[9].mxu1  ;;  %v1898_v45 = vsel %vm1891_vm3, %v4826_v34, -inf }
 0x38c   : > { %v1599_v36 = vpop.f32.mrb[10].mxu1 }
 0x38d   : > { %v3596_v37 = vpop.f32.mrb[11].mxu1  ;;  %v1901_v38 = vsel %vm1891_vm3, %v1599_v36, -inf }
 0x38e   : > { %1902 = vmax.xlane.f32.xlu1 %v1901_v38  ;;  %v3989_v37 = vunpack.i.l.bf16 %v4845_v52 }
 0x390   : > { %v1671_v39 = vpop.f32.mrb[2].mxu0  ;;  %v1743_v40 = vpop.f32.mrb[12].mxu1 }
 0x391   : > { %v3601_v41 = vpop.f32.mrb[3].mxu0  ;;  %v3606_v42 = vpop.f32.mrb[13].mxu1  ;;  %v1907_v43 = vsel %vm1891_vm3, %v1743_v40, -inf  ;;  %v1904_v44 = vsel %vm1891_vm3, %v1671_v39, -inf }
 0x392   : > { %1908 = vmax.xlane.f32.xlu1 %v1907_v43  ;;  %1905 = vmax.xlane.f32.xlu0 %v1904_v44 }
 0x396   : > { %1899 = vmax.xlane.f32.xlu0 %v1898_v45 }
 0x398   : > { %v4833_v46 = vpop.f32.mrb[4].mxu0  ;;  %v4835_v47 = vpop.f32.mrb[14].mxu1 }
 0x399   : > { %v3611_v48 = vpop.f32.mrb[5].mxu0  ;;  %v3616_v49 = vpop.f32.mrb[15].mxu1  ;;  %v1913_v50 = vsel %vm1891_vm3, %v4835_v47, -inf  ;;  %v1910_v51 = vsel %vm1891_vm3, %v4833_v46, -inf }
 0x39a   : > { %1914 = vmax.xlane.f32.xlu1 %v1913_v50  ;;  %1911 = vmax.xlane.f32.xlu0 %v1910_v51 }
 0x3ab   : > { %4002 = vrot.lane.b32.xlu1 %v4780_v14, %s4274_s27  ;;  %s4283_s27 = smov 48  }
 0x3b0   : > { %3997 = vrot.lane.b32.xlu0 %v4780_v14, %s4273_s30  ;;  %s4282_s30 = smov 56  }
 0x3d5   : > { %v1894_v53 = vpop.xlane.xlu0 %1893 }
 0x3d6   : > { %v1916_v54 = vsub.f32 %v1383_v28, %v1894_v53 }
 0x3d8   : > { %v1924_v55 = vmul.f32 1.442695, %v1916_v54  ;;  %v2876_v54 = vld [vmem:[#allocation7] sm:$0xff] }
 0x3da   : > { %4006 = vpow2.f32 %v1924_v55  ;;  %v2877_v55 = vld [vmem:[#allocation7 + $0x8] sm:$0xff] }
 0x3db   : > { %v3815_v56 = vpack.c.bf16 %v2877_v55, %v2876_v54  ;;  %v2878_v55 = vld [vmem:[#allocation7 + $0x10] sm:$0xff] }
 0x3e4   : > { %v4007_v59 = vpop.eup %4006 }
 0x3e5   : > { %3622 = vmatmul.mubr.msk.f32.vlgmr.msra.gmra.mrb[6].mxu0 %vm1891_vm3, %v4007_v59  ;;  %v1940_v61 = vsel %vm1891_vm3, %v4007_v59, 0.0 }
 0x3e6   : > { %3798 = vmatpush3.bf16.msra.mxu0 %v3797_v60  ;;  %1941 = vadd.xlane.f32.xlu0 %v1940_v61 }
 0x3e7   : > { %3635 = vmatprep.mubr.msk.f32.mxu0 %vm4266_vm0, %v4267_v1  ;;  %3802 = vmatprep.subr.bf16.mxu0 %v4265_v0 }
 0x40f   : > { %v1897_v2 = vpop.xlane.xlu1 %1896 }
 0x410   : > { %v1917_v3 = vsub.f32 %v1455_v31, %v1897_v2 }
 0x412   : > { %v1926_v4 = vmul.f32 1.442695, %v1917_v3 }
 0x414   : > { %4008 = vpow2.f32 %v1926_v4 }
 0x41b   : > { %v1903_v7 = vpop.xlane.xlu1 %1902 }
 0x41c   : > { %v1919_v8 = vsub.f32 %v1599_v36, %v1903_v7  ;;  %v3990_v36 = vunpack.i.h.bf16 %v4845_v52 }
 0x41e   : > { %v4009_v9 = vpop.eup %4008  ;;  %v1930_v11 = vmul.f32 1.442695, %v1919_v8  ;;  %v3803_v43 = vpack.c.bf16 %v3990_v36, %v3989_v37 }
 0x41f   : > { %v1909_v12 = vpop.xlane.xlu1 %1908  ;;  %v1906_v13 = vpop.xlane.xlu0 %1905  ;;  %3629 = vmatmul.mubr.msk.f32.vlgmr.msra.gmra.mrb[16].mxu1 %vm1891_vm3, %v4009_v9  ;;  %v1943_v14 = vsel %vm1891_vm3, %v4009_v9, 0.0  ;;  %v4275_v9 = vmov 1983009808  }
 0x420   : > { %4010 = vpow2.f32 %v1930_v11  ;;  %v1921_v15 = vsub.f32 %v1743_v40, %v1909_v12  ;;  %v1920_v16 = vsub.f32 %v1671_v39, %v1906_v13  ;;  %3801 = vmatpush3.bf16.msra.mxu1 %v3800_v10  ;;  %1944 = vadd.xlane.f32.xlu1 %v1943_v14  ;;  %v2567_v10 = vunpack.c.l.s4 %v4275_v9 }
 0x421   : > { %3642 = vmatprep.mubr.msk.f32.mxu1 %vm4266_vm0, %v4267_v1  ;;  %3805 = vmatprep.subr.bf16.mxu1 %v4265_v0  ;;  %v2569_v11 = vlaneseq }
 0x422   : > { %v1934_v17 = vmul.f32 1.442695, %v1921_v15  ;;  %v1932_v18 = vmul.f32 1.442695, %v1920_v16 }
 0x423   : > { %v1900_v19 = vpop.xlane.xlu0 %1899 }
 0x424   : > { %4012 = vpow2.f32 %v1934_v17  ;;  %v1918_v20 = vsub.f32 %v4826_v34, %v1900_v19  ;;  %v2570_v19 = vshrl.u32 %v2569_v11, 7  ;;  %v2880_v11 = vld [vmem:[#allocation7 + $0x20] sm:$0xff] }
 0x425   : > { %4014 = vpow2.f32 %v1932_v18  ;;  %v2568_v18 = vunpack.c.0.s8 %v2567_v10 }
 0x426   : > { %v1928_v23 = vmul.f32 1.442695, %v1918_v20 }
 0x427   : > { %v1915_v24 = vpop.xlane.xlu1 %1914  ;;  %v1912_v25 = vpop.xlane.xlu0 %1911 }
 0x428   : > { %4016 = vpow2.f32 %v1928_v23  ;;  %v1923_v26 = vsub.f32 %v4835_v47, %v1915_v24  ;;  %v1922_v27 = vsub.f32 %v4833_v46, %v1912_v25 }
 0x42a   : > { %v4011_v28 = vpop.eup %4010  ;;  %v1938_v30 = vmul.f32 1.442695, %v1923_v26  ;;  %v1936_v31 = vmul.f32 1.442695, %v1922_v27  ;;  %v4891_v26 = vsub.s32 %v2568_v18, %v2570_v19 }
 0x42b   : > { %v4003_v32 = vpop.permute.xlu1 %4002  ;;  %3643 = vmatmul.mubr.msk.f32.vlgmr.msra.gmra.mrb[18].mxu1 %vm1891_vm3, %v4011_v28  ;;  %v3998_v40 = vpop.permute.xlu0 %3997  ;;  %v1949_v50 = vsel %vm1891_vm3, %v4011_v28, 0.0  ;;  %v2632_v28 = vunpack.c.0.s8 %v2631_v22 }
 0x42c   : > { %4018 = vpow2.f32 %v1938_v30  ;;  %v4005_v33 = vunpack.i.h.bf16 %v4003_v32  ;;  %v4004_v34 = vunpack.i.l.bf16 %v4003_v32  ;;  %3807 = vmatpush3.bf16.msra.mxu1 %v3806_v29  ;;  %3656 = vmatprep.mubr.msk.f32.mxu1 %vm4266_vm0, %v4267_v1  ;;  %v4000_v44 = vunpack.i.h.bf16 %v3998_v40 }
 0x42d   : > { %4020 = vpow2.f32 %v1936_v31  ;;  %3811 = vmatprep.subr.bf16.mxu1 %v4265_v0  ;;  %v3999_v45 = vunpack.i.l.bf16 %v3998_v40  ;;  %v4894_v36 = vsub.s32 %v2632_v28, %v2570_v19 }
 0x42e   : > { %v4013_v35 = vpop.eup %4012  ;;  %v3812_v38 = vpack.c.bf16 %v4005_v33, %v4004_v34 }
 0x42f   : > { %v4015_v39 = vpop.eup %4014  ;;  %3657 = vmatmul.mubr.msk.f32.vlgmr.msra.gmra.mrb[20].mxu1 %vm1891_vm3, %v4013_v35  ;;  %v3809_v48 = vpack.c.bf16 %v4000_v44, %v3999_v45  ;;  %v1955_v52 = vsel %vm1891_vm3, %v4013_v35, 0.0 }
 0x430   : > { %v1952_v41 = vsel %vm1891_vm3, %v4015_v39, 0.0  ;;  %3813 = vmatpush3.bf16.msra.mxu1 %v3812_v38  ;;  %3670 = vmatprep.mubr.msk.f32.mxu1 %vm4266_vm0, %v4267_v1 }
 0x431   : > { %1953 = vadd.xlane.f32.xlu1 %v1952_v41  ;;  %3826 = vmatprep.subr.bf16.mxu1 %v4265_v0 }
 0x432   : > { %v4017_v42 = vpop.eup %4016 }
 0x433   : > { %3636 = vmatmul.mubr.msk.f32.vlgmr.msra.gmra.mrb[8].mxu0 %vm1891_vm3, %v4017_v42  ;;  %v1946_v46 = vsel %vm1891_vm3, %v4017_v42, 0.0 }
 0x434   : > { %3804 = vmatpush3.bf16.msra.mxu0 %v3803_v43  ;;  %1947 = vadd.xlane.f32.xlu0 %v1946_v46 }
 0x435   : > { %3649 = vmatprep.mubr.msk.f32.mxu0 %vm4266_vm0, %v4267_v1  ;;  %3808 = vmatprep.subr.bf16.mxu0 %v4265_v0 }
 0x436   : > { %v4019_v47 = vpop.eup %4018 }
 0x437   : > { %v4021_v49 = vpop.eup %4020  ;;  %3650 = vmatmul.mubr.msk.f32.vlgmr.msra.gmra.mrb[10].mxu0 %vm1891_vm3, %v4015_v39  ;;  %3671 = vmatmul.mubr.msk.f32.vlgmr.msra.gmra.mrb[22].mxu1 %vm1891_vm3, %v4019_v47  ;;  %v1961_v53 = vsel %vm1891_vm3, %v4019_v47, 0.0 }
 0x438   : > { %3810 = vmatpush3.bf16.msra.mxu0 %v3809_v48  ;;  %1950 = vadd.xlane.f32.xlu0 %v1949_v50  ;;  %v1958_v51 = vsel %vm1891_vm3, %v4021_v49, 0.0 }
 0x439   : > { %1959 = vadd.xlane.f32.xlu1 %v1958_v51  ;;  %3663 = vmatprep.mubr.msk.f32.mxu0 %vm4266_vm0, %v4267_v1 }
 0x43a   : > { %3814 = vmatprep.subr.bf16.mxu0 %v4265_v0  ;;  %3708 = vmatprep.mubr.msk.f32.mxu1 %vm4266_vm0, %v4267_v1 }
 0x43b   : > { %3664 = vmatmul.mubr.msk.f32.vlgmr.msra.gmra.mrb[12].mxu0 %vm1891_vm3, %v4021_v49 }
 0x43c   : > { %1956 = vadd.xlane.f32.xlu0 %v1955_v52  ;;  %3689 = vmatprep.mubr.msk.f32.mxu0 %vm4266_vm0, %v4267_v1 }
 0x43d   : > { %3816 = vmatpush3.bf16.msra.mxu0 %v3815_v56  ;;  %v2879_v56 = vld [vmem:[#allocation7 + $0x18] sm:$0xff] }
 0x43e   : > { %3817 = vmatprep.subr.bf16.mxu0 %v4265_v0 }
 0x440   : > { %1962 = vadd.xlane.f32.xlu0 %v1961_v53 }
 0x473   : > { %v1942_v59 = vpop.xlane.xlu0 %1941 }
 0x4ad   : > { %v1945_v61 = vpop.xlane.xlu1 %1944 }
 0x4ae   : > { %4022 = vrcp.f32 %v1945_v61 }
 0x4b8   : > { %v2033_v57 = vpop.f32.mrb[6].mxu0  ;;  %v4023_v4 = vpop.eup %4022 }
 0x4b9   : > { %v3623_v58 = vpop.f32.mrb[7].mxu0 }
 0x4be   : > { %v1954_v7 = vpop.xlane.xlu1 %1953 }
 0x4c1   : > { %v1948_v60 = vpop.xlane.xlu0 %1947 }
 0x4c5   : > { %v1951_v62 = vpop.xlane.xlu0 %1950 }
 0x4c6   : > { %4024 = vrcp.f32 %v1951_v62  ;;  %v1960_v17 = vpop.xlane.xlu1 %1959 }
 0x4c7   : > { %4026 = vrcp.f32 %v1942_v59 }
 0x4c8   : > { %4028 = vrcp.f32 %v1948_v60 }
 0x4c9   : > { %v1957_v3 = vpop.xlane.xlu0 %1956 }
 0x4cd   : > { %v1963_v5 = vpop.xlane.xlu0 %1962 }
 0x4ce   : > { %4030 = vrcp.f32 %v1963_v5 }
 0x4cf   : > { %4032 = vrcp.f32 %v1957_v3  ;;  %v3818_v3 = vpack.c.bf16 %v2879_v56, %v2878_v55 }
 0x4d0   : > { %v4025_v6 = vpop.eup %4024  ;;  %4034 = vrcp.f32 %v1954_v7 }
 0x4d1   : > { %v4027_v24 = vpop.eup %4026  ;;  %4036 = vrcp.f32 %v1960_v17  ;;  %3819 = vmatpush3.bf16.msra.mxu0 %v3818_v3 }
 0x4d2   : > { %v4029_v25 = vpop.eup %4028  ;;  %v2556_v29 = vmul.f32 %v4027_v24, %v2033_v57  ;;  %3820 = vmatprep.subr.bf16.mxu0 %v4265_v0 }
 0x4d8   : > { %v4031_v34 = vpop.eup %4030 }
 0x4d9   : > { %v4033_v39 = vpop.eup %4032 }
 0x4da   : > { %v4035_v51 = vpop.eup %4034 }
 0x4db   : > { %v4037_v57 = vpop.eup %4036 }
 0x4f2   : > { %v2106_v63 = vpop.f32.mrb[16].mxu1 }
 0x4f3   : > { %v3630_v2 = vpop.f32.mrb[17].mxu1  ;;  %v2557_v12 = vmul.f32 %v4023_v4, %v2106_v63 }
 0x4fe   : > { %v2252_v8 = vpop.f32.mrb[18].mxu1 }
 0x4ff   : > { %v2559_v13 = vmul.f32 %v4025_v6, %v2252_v8  ;;  %v3644_v14 = vpop.f32.mrb[19].mxu1 }
 0x501   : > { %v2580_v15 = vcombine.low %v2557_v12, %v2559_v13  ;;  %v2581_v16 = vcombine.high %v2557_v12, %v2559_v13  ;;  %v2881_v12 = vld [vmem:[#allocation7 + $0x28] sm:$0xff] }
 0x502   : > { %v2398_v20 = vpop.f32.mrb[20].mxu1 }
 0x503   : > { %v3658_v23 = vpop.f32.mrb[21].mxu1  ;;  %v2588_v35 = vrot.slane %v2580_v15, %v4891_v26  ;;  %v2595_v40 = vrot.slane %v2581_v16, %v4891_v26  ;;  %v2561_v46 = vmul.f32 %v4033_v39, %v2398_v20  ;;  %v3821_v20 = vpack.c.bf16 %v2881_v12, %v2880_v11  ;;  %v2882_v39 = vld [vmem:[#allocation7 + $0x30] sm:$0xff] }
 0x505   : > { %3822 = vmatpush3.bf16.msra.mxu0 %v3821_v20  ;;  %v4046_v20 = vld [vmem:[%s4618_s8] sm:$0xff]  ;;  %s5152_s8 = sld [smem:[#allocation30_spill]] }
 0x506   : > { %v2179_v27 = vpop.f32.mrb[8].mxu0  ;;  %3823 = vmatprep.subr.bf16.mxu0 %v4265_v0 }
 0x507   : > { %v2558_v30 = vmul.f32 %v4029_v25, %v2179_v27  ;;  %v3637_v31 = vpop.f32.mrb[9].mxu0 }
 0x509   : > { %v2564_v32 = vcombine.low %v2556_v29, %v2558_v30  ;;  %v2565_v33 = vcombine.high %v2556_v29, %v2558_v30 }
 0x50a   : > { %v2325_v37 = vpop.f32.mrb[10].mxu0  ;;  %v2544_v38 = vpop.f32.mrb[22].mxu1 }
 0x50b   : > { %v2572_v41 = vrot.slane %v2564_v32, %v4891_v26  ;;  %v2579_v42 = vrot.slane %v2565_v33, %v4891_v26  ;;  %v2563_v43 = vmul.f32 %v4031_v34, %v2544_v38  ;;  %v3651_v44 = vpop.f32.mrb[11].mxu0  ;;  %v3672_v45 = vpop.f32.mrb[23].mxu1  ;;  %v2560_v63 = vmul.f32 %v4035_v51, %v2325_v37 }
 0x50d   : > { %v2628_v47 = vcombine.low %v2572_v41, %v2588_v35  ;;  %v2629_v48 = vcombine.high %v2572_v41, %v2588_v35  ;;  %v2644_v49 = vcombine.low %v2579_v42, %v2595_v40  ;;  %v2645_v50 = vcombine.high %v2579_v42, %v2595_v40  ;;  %v2883_v40 = vld [vmem:[#allocation7 + $0x38] sm:$0xff] }
 0x50e   : > { %v2612_v52 = vcombine.low %v2561_v46, %v2563_v43  ;;  %v2613_v53 = vcombine.high %v2561_v46, %v2563_v43  ;;  %v2471_v54 = vpop.f32.mrb[12].mxu0 }
 0x50f   : > { %v2636_v58 = vrot.slane %v2628_v47, %v4894_v36  ;;  %v2643_v59 = vrot.slane %v2629_v48, %v4894_v36  ;;  %v2652_v60 = vrot.slane %v2644_v49, %v4894_v36  ;;  %v2659_v61 = vrot.slane %v2645_v50, %v4894_v36  ;;  %v3665_v62 = vpop.f32.mrb[13].mxu0 }
 0x510   : > { %v2562_v2 = vmul.f32 %v4037_v57, %v2471_v54  ;;  %v2620_v8 = vrot.slane %v2612_v52, %v4891_v26  ;;  %v2627_v17 = vrot.slane %v2613_v53, %v4891_v26  ;;  %v3824_v49 = vpack.c.bf16 %v2883_v40, %v2882_v39  ;;  %v3002_v39 = vld [vmem:[#allocation8 + $0x38] sm:$0xff] }
 0x511   : > { %v3393_v4 = vcombine.low %v2636_v58, %v2643_v59  ;;  %v3395_v5 = vcombine.high %v2636_v58, %v2643_v59  ;;  %v3397_v6 = vcombine.low %v2652_v60, %v2659_v61  ;;  %v3399_v7 = vcombine.high %v2652_v60, %v2659_v61 }
 0x512   : > { %v2596_v9 = vcombine.low %v2560_v63, %v2562_v2  ;;  %v2597_v10 = vcombine.high %v2560_v63, %v2562_v2  ;;  %3825 = vmatpush3.bf16.msra.mxu0 %v3824_v49 }
 0x513   : > { %v2708_v13 = vrot.slane %v3393_v4, %v4891_v26  ;;  %v2724_v14 = vrot.slane %v3395_v5, %v4891_v26  ;;  %v2740_v15 = vrot.slane %v3397_v6, %v4891_v26  ;;  %v2756_v16 = vrot.slane %v3399_v7, %v4891_v26  ;;  %3838 = vmatprep.subr.bf16.mxu0 %v4265_v0 }
 0x514   : > { %v2604_v18 = vrot.slane %v2596_v9, %v4891_v26  ;;  %v2611_v19 = vrot.slane %v2597_v10, %v4891_v26 }
 0x515   : > { %v2765_v21 = vcombine.high %v2708_v13, %v2724_v14  ;;  %v2797_v22 = vcombine.high %v2740_v15, %v2756_v16  ;;  %v2764_v23 = vcombine.low %v2708_v13, %v2724_v14  ;;  %v2796_v24 = vcombine.low %v2740_v15, %v2756_v16  ;;  %v3401_v16 = vld [vmem:[%s5085_s9] ss:$0 sm:$0xff] }
 0x516   : > { %v2660_v25 = vcombine.low %v2604_v18, %v2620_v8  ;;  %v2661_v27 = vcombine.high %v2604_v18, %v2620_v8  ;;  %v2676_v28 = vcombine.low %v2611_v19, %v2627_v17  ;;  %v2677_v29 = vcombine.high %v2611_v19, %v2627_v17 }
 0x517   : > { %v2779_v30 = vrot.slane %v2765_v21, %v4894_v36  ;;  %v2811_v31 = vrot.slane %v2797_v22, %v4894_v36  ;;  %v2772_v32 = vrot.slane %v2764_v23, %v4894_v36  ;;  %v2804_v33 = vrot.slane %v2796_v24, %v4894_v36 }
 0x518   : > { %v2668_v34 = vrot.slane %v2660_v25, %v4894_v36  ;;  %v2675_v35 = vrot.slane %v2661_v27, %v4894_v36  ;;  %v2684_v37 = vrot.slane %v2676_v28, %v4894_v36  ;;  %v2691_v38 = vrot.slane %v2677_v29, %v4894_v36  ;;  %v2996_v29 = vld [vmem:[#allocation8 + $0x8] sm:$0xff] }
 0x519   : > { %v2830_v41 = vcombine.low %v2779_v30, %v2811_v31  ;;  %v2829_v42 = vcombine.high %v2772_v32, %v2804_v33  ;;  %v2831_v43 = vcombine.high %v2779_v30, %v2811_v31  ;;  %v2828_v44 = vcombine.low %v2772_v32, %v2804_v33  ;;  %v2997_v31 = vld [vmem:[#allocation8 + $0x10] sm:$0xff]  ;;  %v2998_v32 = vld [vmem:[#allocation8 + $0x18] sm:$0xff] }
 0x51a   : > { %v3394_v45 = vcombine.low %v2668_v34, %v2675_v35  ;;  %v3396_v46 = vcombine.high %v2668_v34, %v2675_v35  ;;  %v3398_v47 = vcombine.low %v2684_v37, %v2691_v38  ;;  %v3400_v48 = vcombine.high %v2684_v37, %v2691_v38  ;;  %v2999_v34 = vld [vmem:[#allocation8 + $0x20] sm:$0xff]  ;;  %v3000_v35 = vld [vmem:[#allocation8 + $0x28] sm:$0xff]  ;;  %v3001_v38 = vld [vmem:[#allocation8 + $0x30] sm:$0xff] }
 0x51b   : > { %2841 = vrot.lane.b32.xlu0 %v2830_v41, %s4277_s12  ;;  %2837 = vrot.lane.b32.xlu1 %v2829_v42, %s4278_s16  ;;  %v3830_v33 = vpack.c.bf16 %v2998_v32, %v2997_v31  ;;  %v3833_v37 = vpack.c.bf16 %v3000_v35, %v2999_v34  ;;  %v3836_v40 = vpack.c.bf16 %v3002_v39, %v3001_v38  ;;  %v3409_v34 = vld [vmem:[%s5152_s8] ss:$0 sm:$0xff]  ;;  %s676_s12 = scalar_lea.vmem [#allocation10], %s5154_s24 }
 0x51c   : > { %v2715_v50 = vrot.slane %v3394_v45, %v4891_v26  ;;  %v2731_v51 = vrot.slane %v3396_v46, %v4891_v26  ;;  %v2747_v52 = vrot.slane %v3398_v47, %v4891_v26  ;;  %v2763_v53 = vrot.slane %v3400_v48, %v4891_v26  ;;  %v3403_v45 = vld [vmem:[%s5086_s10] ss:$0 sm:$0xff]  ;;  %s3230_s16 = sshll.u32 %s676_s12, 4  ;;  %s5028_s16 = int_to_ptr.vmem [resolvable:$true] %s3230_s16 }
 0x51d   : > { %v3404_v47 = vld [vmem:[%s5087_s11] ss:$0 sm:$0xff]  ;;  %s4163_s25 = scalar_lea.vmem %s5028_s16, 128 }
 0x51e   : > { %v2780_v54 = vcombine.low %v2715_v50, %v2731_v51  ;;  %v2812_v55 = vcombine.low %v2747_v52, %v2763_v53  ;;  %v2781_v56 = vcombine.high %v2715_v50, %v2731_v51  ;;  %v2813_v57 = vcombine.high %v2747_v52, %v2763_v53  ;;  %v3091_v50 = vld [vmem:[%s5148_s20] sm:$0xff]  ;;  %v3092_v51 = vld [vmem:[%s5148_s20 + $0x8] sm:$0xff]  ;;  %v3093_v53 = vld [vmem:[%s5148_s20 + $0x10] sm:$0xff]  ;;  %p4164_p2 = scmp.ne.s32.totalorder %s5028_s16, %s4163_s25 }
 0x51f   : > { %2845 = vrot.lane.b32.xlu1 %v2831_v43, %s4279_s14  ;;  %v3839_v52 = vpack.c.bf16 %v3092_v51, %v3091_v50  ;;  %s5149_s14 = sld [smem:[#allocation27_spill]] }
 0x520   : > { %v2788_v58 = vrot.slane %v2780_v54, %v4894_v36  ;;  %v2820_v59 = vrot.slane %v2812_v55, %v4894_v36  ;;  %v2795_v60 = vrot.slane %v2781_v56, %v4894_v36  ;;  %v2827_v61 = vrot.slane %v2813_v57, %v4894_v36  ;;  %v3094_v54 = vld [vmem:[%s5148_s20 + $0x18] sm:$0xff]  ;;  %v3095_v56 = vld [vmem:[%s5148_s20 + $0x20] sm:$0xff]  ;;  %v3096_v57 = vld [vmem:[%s5148_s20 + $0x28] sm:$0xff]  ;;  %p4165_p10 = pnand %p4164_p2, %p5156_p6 }
 0x521   : > { %v3842_v55 = vpack.c.bf16 %v3094_v54, %v3093_v53 }
 0x522   : > { %v2833_v62 = vcombine.high %v2788_v58, %v2820_v59  ;;  %v2832_v63 = vcombine.low %v2788_v58, %v2820_v59  ;;  %v2835_v26 = vcombine.high %v2795_v60, %v2827_v61  ;;  %v2834_v2 = vcombine.low %v2795_v60, %v2827_v61  ;;  %v3097_v59 = vld [vmem:[%s5148_s20 + $0x30] sm:$0xff]  ;;  %v3098_v60 = vld [vmem:[%s5148_s20 + $0x38] sm:$0xff]  ;;  %p4166_p3 = pneg %p4165_p10 }
 0x523   : > { %v3845_v58 = vpack.c.bf16 %v3096_v57, %v3095_v56  ;;  %v3848_v61 = vpack.c.bf16 %v3098_v60, %v3097_v59 }
 0x524   : > { %2853 = vrot.lane.b32.xlu0 %v2833_v62, %s4280_s2  ;;  %2849 = vrot.lane.b32.xlu1 %v2832_v63, %s4281_s21  ;;  %v3099_v62 = vld [vmem:[%s5148_s20 + $0x40] sm:$0xff]  ;;  %v3100_v63 = vld [vmem:[%s5148_s20 + $0x48] sm:$0xff]  ;;  %s5155_s21 = sld [smem:[#allocation32_spill]] }
 0x528   : > { %2861 = vrot.lane.b32.xlu0 %v2835_v26, %s4282_s30  ;;  %2857 = vrot.lane.b32.xlu1 %v2834_v2, %s4283_s27  ;;  %v3851_v26 = vpack.c.bf16 %v3100_v63, %v3099_v62  ;;  %v3101_v2 = vld [vmem:[%s5148_s20 + $0x50] sm:$0xff]  ;;  %s5150_s30 = sld [smem:[#allocation29_spill]] }
 0x529   : > { %s5151_s27 = sld [smem:[#allocation18_spill]] }
 0x52f   : > { %s3412_s23 = sshll.u32 %s5151_s27, 7  ;;  %s4284_s27 = smov [#allocation10]  }
 0x530   : > { %s4167_s8 = sshll.u32 %s4284_s27, 4  ;;  %s4168_s8 = int_to_ptr.vmem [resolvable:$false] %s4167_s8 }
 0x531   : > { %s4169_s22 = scalar_lea.vmem %s4168_s8, 256  ;;  %p4170_p4 = scmp.lt.s32.totalorder %s5028_s16, %s4168_s8 }
 0x532   : > { %p4171_p9 = scmp.lt.s32.totalorder %s4169_s22, %s4163_s25 }
 0x534   : > { %p4172_p5 = por %p4171_p9, %p4170_p4 }
 0x536   : > { %p4173_p7 = pnand %p4172_p5, %p4166_p3 }
 0x58d   : > { %v2838_v3 = vpop.permute.xlu1 %2837  ;;  %v2842_v5 = vpop.permute.xlu0 %2841 }
 0x58e   : > { %v2864_v6 = vsel %vm1314_vm2, %v2828_v44, %v2838_v3  ;;  %v3102_v3 = vld [vmem:[%s5148_s20 + $0x58] sm:$0xff] }
 0x58f   : > { %v2865_v36 = vsel %vm1891_vm3, %v2864_v6, %v2842_v5  ;;  %v3103_v5 = vld [vmem:[%s5148_s20 + $0x60] sm:$0xff]  ;;  %v3104_v6 = vld [vmem:[%s5148_s20 + $0x68] sm:$0xff] }
 0x591   : > { %v2846_v4 = vpop.permute.xlu1 %2845 }
 0x592   : > { %v2867_v7 = vsel %vm2866_vm4, %v2865_v36, %v2846_v4  ;;  %v3854_v4 = vpack.c.bf16 %v3102_v3, %v3101_v2  ;;  %v3857_v36 = vpack.c.bf16 %v3104_v6, %v3103_v5 }
 0x596   : > { %v2854_v8 = vpop.permute.xlu0 %2853  ;;  %v2850_v9 = vpop.permute.xlu1 %2849 }
 0x597   : > { %v2869_v10 = vsel %vm2868_vm5, %v2867_v7, %v2850_v9  ;;  %v3105_v7 = vld [vmem:[%s5148_s20 + $0x70] sm:$0xff] }
 0x598   : > { %v2871_v12 = vsel %vm2870_vm6, %v2869_v10, %v2854_v8  ;;  %v3106_v8 = vld [vmem:[%s5148_s20 + $0x78] sm:$0xff]  ;;  %v3405_v10 = vld [vmem:[%s5149_s14] ss:$0 sm:$0xff] }
 0x599   : > { %v3860_v9 = vpack.c.bf16 %v3106_v8, %v3105_v7 }
 0x59a   : > { %v2862_v11 = vpop.permute.xlu0 %2861  ;;  %v2858_v13 = vpop.permute.xlu1 %2857 }
 0x59b   : > { %v2873_v14 = vsel %vm2872_vm7, %v2871_v12, %v2858_v13 }
 0x59c   : > { %v2875_v15 = vsel %vm2874_vm8, %v2873_v14, %v2862_v11 }
 0x59d   : > { %3690 = vmatmul.mubr.msk.f32.vlgmr.msra.gmra.mrb[14].mxu0 %vm695_vm1, %v2875_v15 }
 0x59e   : > { %3743 = vmatprep.mubr.msk.f32.mxu0 %vm4266_vm0, %v4267_v1  ;;  %v2995_v1 = vld [vmem:[#allocation8] sm:$0xff]  ;;  %3840 = vmatpush3.bf16.msra.mxu0 %v3839_v52 }
 0x59f   : > { %v3827_v30 = vpack.c.bf16 %v2996_v29, %v2995_v1  ;;  %3841 = vmatprep.subr.bf16.mxu0 %v4265_v0 }
 0x5a1   : > { %3828 = vmatpush3.bf16.msra.mxu1 %v3827_v30 }
 0x5a2   : > { %3829 = vmatprep.subr.bf16.mxu1 %v4265_v0  ;;  %3843 = vmatpush3.bf16.msra.mxu0 %v3842_v55 }
 0x5a3   : > { %3844 = vmatprep.subr.bf16.mxu0 %v4265_v0 }
 0x5a5   : > { %3831 = vmatpush3.bf16.msra.mxu1 %v3830_v33 }
 0x5a6   : > { %3832 = vmatprep.subr.bf16.mxu1 %v4265_v0  ;;  %3846 = vmatpush3.bf16.msra.mxu0 %v3845_v58 }
 0x5a7   : > { %3847 = vmatprep.subr.bf16.mxu0 %v4265_v0 }
 0x5a9   : > { %3834 = vmatpush3.bf16.msra.mxu1 %v3833_v37  ;;  %v3410_v37 = vld [vmem:[%s5153_s15] ss:$0 sm:$0xff] }
 0x5aa   : > { %3835 = vmatprep.subr.bf16.mxu1 %v4265_v0  ;;  %3849 = vmatpush3.bf16.msra.mxu0 %v3848_v61 }
 0x5ab   : > { %3850 = vmatprep.subr.bf16.mxu0 %v4265_v0 }
 0x5ad   : > { %3837 = vmatpush3.bf16.msra.mxu1 %v3836_v40 }
 0x5ae   : > { %3852 = vmatpush3.bf16.msra.mxu0 %v3851_v26 }
 0x5af   : > { %3853 = vmatprep.subr.bf16.mxu0 %v4265_v0 }
 0x5b2   : > { %3855 = vmatpush3.bf16.msra.mxu0 %v3854_v4 }
 0x5b3   : > { %3856 = vmatprep.subr.bf16.mxu0 %v4265_v0 }
 0x5b6   : > { %3858 = vmatpush3.bf16.msra.mxu0 %v3857_v36 }
 0x5b7   : > { %3859 = vmatprep.subr.bf16.mxu0 %v4265_v0 }
 0x5ba   : > { %3861 = vmatpush3.bf16.msra.mxu0 %v3860_v9 }
 0x670   : > { %v2960_v17 = vpop.f32.mrb[14].mxu0 }
 0x671   : > { %v2961_v18 = vadd.f32 %v3401_v16, %v2960_v17  ;;  %v3691_v19 = vpop.f32.mrb[15].mxu0 }
 0x672   : > { %v3408_v19 = vld [vmem:[%s5150_s30] ss:$0 sm:$0xff]  ;;  %s5026_s30 = scalar_lea.hbm %s5155_s21, %s3412_s23 }
 0x673   : > { %v2964_v21 = vadd.f32 %v4046_v20, %v2961_v18 }
 0x675   : > { %v2967_v22 = vsel %vm695_vm1, %v2964_v21, 0.0 }
 0x676   : > { %2968 = vadd.xlane.f32.xlu1 %v2967_v22 }
 0x703   : > { %v2969_v23 = vpop.xlane.xlu1 %2968 }
 0x704   : > { %v2971_v24 = vmul.f32 0.015625, %v2969_v23 }
 0x706   : > { %v2972_v25 = vsub.f32 %v2964_v21, %v2971_v24 }
 0x708   : > { %v2973_v27 = vmul.f32 %v2972_v25, %v2972_v25 }
 0x70a   : > { %v2974_v28 = vsel %vm695_vm1, %v2973_v27, 0.0 }
 0x70b   : > { %2975 = vadd.xlane.f32.xlu0 %v2974_v28 }
 0x798   : > { %v2976_v41 = vpop.xlane.xlu0 %2975 }
 0x799   : > { %v2977_v42 = vmul.f32 0.015625, %v2976_v41 }
 0x79b   : > { %v2978_v43 = vadd.f32 1e-05, %v2977_v42 }
 0x79d   : > { %4038 = vrsqrt.f32 %v2978_v43 }
 0x7a7   : > { %v4039_v44 = vpop.eup %4038 }
 0x7a8   : > { %v2980_v46 = vmul.f32 %v4039_v44, %v2972_v25 }
 0x7aa   : > { %v2987_v48 = vmul.f32 %v3403_v45, %v2980_v46 }
 0x7ac   : > { %v2994_v49 = vadd.f32 %v3404_v47, %v2987_v48 }
 0x7ae   : > { %3709 = vmatmul.mubr.msk.f32.vlgmr.msra.gmra.mrb[24].mxu1 %vm695_vm1, %v2994_v49 }
 0x881   : > { %v3079_v11 = vpop.f32.mrb[24].mxu1 }
 0x882   : > { %v3080_v12 = vadd.f32 %v3405_v10, %v3079_v11  ;;  %v3710_v13 = vpop.f32.mrb[25].mxu1 }
 0x884   : > { %v3407_v14 = vmul.f32 -1.702, %v3080_v12 }
 0x886   : > { %v3085_v15 = vmul.f32 1.442695, %v3407_v14 }
 0x888   : > { %4040 = vpow2.f32 %v3085_v15 }
 0x892   : > { %v4041_v0 = vpop.eup %4040 }
 0x893   : > { %v3087_v16 = vadd.f32 1.0, %v4041_v0 }
 0x895   : > { %4042 = vrcp.f32 %v3087_v16 }
 0x89f   : > { %v4043_v17 = vpop.eup %4042 }
 0x8a0   : > { %v3090_v18 = vmul.f32 %v4043_v17, %v3080_v12 }
 0x8a2   : > { %3744 = vmatmul.mubr.f32.vlgmr.msra.gmra.mrb[16].mxu0 %v3090_v18 }
 0x975   : > { %v3180_v20 = vpop.f32.mrb[16].mxu0 }
 0x976   : > { %v3181_v21 = vadd.f32 %v3408_v19, %v3180_v20  ;;  %v3745_v22 = vpop.f32.mrb[17].mxu0 }
 0x978   : > { %v3184_v23 = vadd.f32 %v3181_v21, %v2994_v49 }
 0x97a   : > { %v3187_v24 = vsel %vm695_vm1, %v3184_v23, 0.0 }
 0x97b   : > { %3188 = vadd.xlane.f32.xlu0 %v3187_v24 }
 0xa08   : > { %v3189_v25 = vpop.xlane.xlu0 %3188 }
 0xa09   : > { %v3190_v27 = vmul.f32 0.015625, %v3189_v25 }
 0xa0b   : > { %v3191_v28 = vsub.f32 %v3184_v23, %v3190_v27 }
 0xa0d   : > { %v3192_v1 = vmul.f32 %v3191_v28, %v3191_v28 }
 0xa0f   : > { %v3193_v29 = vsel %vm695_vm1, %v3192_v1, 0.0 }
 0xa10   : > { %3194 = vadd.xlane.f32.xlu1 %v3193_v29 }
 0xa9d   : > { %v3195_v30 = vpop.xlane.xlu1 %3194 }
 0xa9e   : > { %v3196_v31 = vmul.f32 0.015625, %v3195_v30 }
 0xaa0   : > { %v3197_v32 = vadd.f32 1e-05, %v3196_v31 }
 0xaa2   : > { %4044 = vrsqrt.f32 %v3197_v32 }
 0xaac   : > { %v4045_v33 = vpop.eup %4044 }
 0xaad   : > { %v3199_v35 = vmul.f32 %v4045_v33, %v3191_v28 }
 0xaaf   : > { %v3206_v38 = vmul.f32 %v3409_v34, %v3199_v35 }
 0xab1   : > { %v3213_v39 = vadd.f32 %v3410_v37, %v3206_v38 }
 0xab3   : > { %3214 = vst.msk [vmem:[%s676_s12] sm:$0xff] %vm695_vm1, %v3213_v39 }
 0xab4   : > { %4176 = shalt.err (!%p4173_p7)
}
 0xab5   : > { %s4177_s17 = scalar_lea.hbm %s5026_s30, 128  ;;  %s4181_s23 = scalar_lea.hbm %s5155_s21, 256 }
 0xab6   : > { %p4178_p11 = scmp.ne.s32.totalorder %s5026_s30, %s4177_s17  ;;  %p4182_p12 = scmp.lt.u32.totalorder %s5026_s30, %s5155_s21 }
 0xab7   : > { %p4183_p13 = scmp.lt.u32.totalorder %s4181_s23, %s4177_s17  ;;  %p4185_p2 = scmp.lt.u32.totalorder %s4177_s17, %s5026_s30 }
 0xab8   : > { %p4179_p1 = pnand %p4178_p11, %p5156_p6 }
 0xab9   : > { %p4184_p0 = por %p4183_p13, %p4182_p12 }
 0xaba   : > { %p4180_p8 = pneg %p4179_p1 }
 0xabb   : > { %p4186_p10 = por %p4185_p2, %p4184_p0 }
 0xabd   : > { %p4187_p3 = pnand %p4186_p10, %p4180_p8 }
 0xabf   : > { %4190 = shalt.err (!%p4187_p3)
}
 0xac0   : > { %3874 = dma.vmem_to_hbm [thread:$0]  (%p5156_p6), %s5028_s16, 128, %s5026_s30, %s3216_s1  }
 0xac1 PF: > { %s5157_s14 = sld [smem:[#allocation16_spill]]  ;;  %s5158_s2 = sld [smem:[#allocation19_spill]] }
 0xac2   : > { %p5160_p9 = scmp.ge.s32.totalorder %s4257_s19, 2 }
 0xac7   : > { %s3242_s25 = sand.u32 1, %s5157_s14   ;;  %p5159_p4 = scmp.ne.s32.totalorder %s5158_s2, 0 }
 0xac8   : > { %s3243_s27 = scalar_lea.sflag [#allocation4], %s3242_s25 }
 0xac9   : > { %p3891_p5 = pnand %p5160_p9, %p5159_p4 }
 0xacb   : > { %4232 = dma.done.wait (!%p3891_p5), %s3243_s27, 128  }
 0xacc   : > { %4234 = vsyncadd (!%p3891_p5), %s3243_s27, 4294967168  ;;  %s38_s19 = sadd.s32 1, %s4257_s19   ;;  %s5161_s8 = sld [smem:[#allocation17_spill]] }
 0xacd   : > { %p35_p7 = scmp.ge.s32.totalorder %s38_s19, 4   ;;  %s5162_s29 = sld [smem:[#allocation21_spill]] }
 0xace   : > { %s5163_s18 = sld [smem:[#allocation20_spill]]  ;;  %s5164_s27 = smov %s4241_s28 }
 0xacf   : > { %s5166_s30 = smov %s4253_s0  ;;  %37 = sbr.rel (!%p35_p7) target bundleno = 21 (0x15), region = 158 }
 0xad2   : > { %s5165_s28 = smov %s5161_s8 }
 0xad4   : > { %s5167_s0 = smov %s5163_s18 }
 0xad6   :  { %3248 = vsyncpa [#allocation3], 1 }
 0xad7   :  { %3250 = vsyncpa [#allocation3 + $0x1], 1 }
 0xad8   :  { %3251 = vsyncpa [#allocation6], 1 }
 0xad9   :  { %3253 = vsyncpa [#allocation6 + $0x1], 1 }
 0xada   :  { %3254 = vsyncpa [#allocation9], 1 }
 0xadb   :  { %3255 = vsyncpa [#allocation4], 1 }
 0xadc   :  { %3257 = vsyncpa [#allocation4 + $0x1], 1 }

</bundles_post_ra>
